<compile_context>
chip_gen: v6e
topology: v6e:2x2x1
jax: 0.10.0
libtpu: 0.0.40
codegen_flags: <defaults>
</compile_context>

<pallas_src>
import math
import functools

import jax
import jax.numpy as jnp
from jax import lax
from jax.experimental import pallas as pl
from jax.experimental.pallas import tpu as pltpu

_EPS = 1e-5
_VMEM_LIMIT = 48 * 1024 * 1024          # fits v5e/v6e/v7x scoped VMEM budgets
_VOCAB_BLK = 2048                       # lane-block for the fused fc/argmax kernel


def _round_up(x, m):
    return ((x + m - 1) // m) * m


def _padded_vocab(vocab):
    vpad = _round_up(vocab, 128)
    if vpad > _VOCAB_BLK:
        vpad = _round_up(vpad, _VOCAB_BLK)
    return vpad


def _ln_f32(x, g, b, eps):
    """LayerNorm over the last dim; x, g, b are f32 values (not refs)."""
    mu = jnp.mean(x, axis=-1, keepdims=True)
    c = x - mu
    var = jnp.mean(c * c, axis=-1, keepdims=True)
    return c * lax.rsqrt(var + eps) * g + b


# ----------------------------- fused kernels -------------------------------

def _enc_layer_kernel(x_ref, wqkv_ref, bqkv_ref, wo_ref, bo_ref, g1_ref, b1_ref,
                      w1_ref, c1_ref, w2_ref, c2_ref, g2_ref, b2_ref, o_ref,
                      *, D, scale, eps):
    """One full encoder layer for a single batch item (grid over batch)."""
    x16 = x_ref[0]                                       # (S, D) bf16
    x = x16.astype(jnp.float32)
    qkv = jnp.dot(x16, wqkv_ref[...],
                  preferred_element_type=jnp.float32) + bqkv_ref[...]
    q = qkv[:, :D].astype(jnp.bfloat16)
    k = qkv[:, D:2 * D].astype(jnp.bfloat16)
    v = qkv[:, 2 * D:].astype(jnp.bfloat16)
    s = lax.dot_general(q, k, (((1,), (1,)), ((), ())),
                        preferred_element_type=jnp.float32) * scale
    s = s - jnp.max(s, axis=-1, keepdims=True)
    p = jnp.exp(s)
    p = p / jnp.sum(p, axis=-1, keepdims=True)           # exact divide
    attn = jnp.dot(p.astype(jnp.bfloat16), v, preferred_element_type=jnp.float32)
    o = jnp.dot(attn.astype(jnp.bfloat16), wo_ref[...],
                preferred_element_type=jnp.float32) + bo_ref[...]
    y = _ln_f32(x + o, g1_ref[...], b1_ref[...], eps)
    h = jnp.dot(y.astype(jnp.bfloat16), w1_ref[...],
                preferred_element_type=jnp.float32) + c1_ref[...]
    h = jnp.maximum(h, 0.0)
    z = jnp.dot(h.astype(jnp.bfloat16), w2_ref[...],
                preferred_element_type=jnp.float32) + c2_ref[...]
    y = _ln_f32(y + z, g2_ref[...], b2_ref[...], eps)
    o_ref[0] = y.astype(jnp.bfloat16)


def _mem_kv_kernel(mem_ref, g_ref, b_ref, wkv_ref, bkv_ref, k_ref, v_ref,
                   *, D, eps):
    """Encoder final LN + cross-attention K/V projection (runs once)."""
    m = mem_ref[0].astype(jnp.float32)                   # (S, D)
    y = _ln_f32(m, g_ref[...], b_ref[...], eps)
    kv = jnp.dot(y.astype(jnp.bfloat16), wkv_ref[...],
                 preferred_element_type=jnp.float32) + bkv_ref[...]
    k_ref[0] = kv[:, :D].astype(jnp.bfloat16)
    v_ref[0] = kv[:, D:].astype(jnp.bfloat16)


def _dec_layer_step_kernel(i_ref, x_ref, kc_ref, vc_ref, kmem_ref, vmem_ref,
                           wqkv_ref, bqkv_ref, wo_sa_ref, bo_sa_ref,
                           g1_ref, b1_ref,
                           wq_ca_ref, bq_ca_ref, wo_ca_ref, bo_ca_ref,
                           g2_ref, b2_ref,
                           w1_ref, c1_ref, w2_ref, c2_ref, g3_ref, b3_ref,
                           y_ref, kc_out_ref, vc_out_ref,
                           *, Tdec, D, scale, eps):
    """One fused decoder layer for ONE new token (per batch item, grid over B)."""
    i = i_ref[0]
    x16 = x_ref[0]                                       # (1, D) bf16
    x = x16.astype(jnp.float32)

    # --- self-attention: project the new token, insert into the K/V cache ---
    qkv = jnp.dot(x16, wqkv_ref[...],
                  preferred_element_type=jnp.float32) + bqkv_ref[...]
    q = qkv[:, :D]
    k_new = qkv[:, D:2 * D].astype(jnp.bfloat16)
    v_new = qkv[:, 2 * D:].astype(jnp.bfloat16)
    row = lax.broadcasted_iota(jnp.int32, (Tdec, D), 0)
    kc = jnp.where(row == i, k_new, kc_ref[0])           # (Tdec, D) bf16
    vc = jnp.where(row == i, v_new, vc_ref[0])
    kc_out_ref[0] = kc
    vc_out_ref[0] = vc

    s = lax.dot_general(q.astype(jnp.bfloat16), kc, (((1,), (1,)), ((), ())),
                        preferred_element_type=jnp.float32) * scale   # (1, Tdec)
    pos = lax.broadcasted_iota(jnp.int32, s.shape, 1)
    s = jnp.where(pos <= i, s, -1e30)                    # mask unwritten positions
    s = s - jnp.max(s, axis=-1, keepdims=True)
    p = jnp.exp(s)
    p = p / jnp.sum(p, axis=-1, keepdims=True)
    attn = jnp.dot(p.astype(jnp.bfloat16), vc, preferred_element_type=jnp.float32)
    o = jnp.dot(attn.astype(jnp.bfloat16), wo_sa_ref[...],
                preferred_element_type=jnp.float32) + bo_sa_ref[...]
    y = _ln_f32(x + o, g1_ref[...], b1_ref[...], eps)

    # --- cross-attention over the precomputed encoder-memory K/V ---
    q2 = jnp.dot(y.astype(jnp.bfloat16), wq_ca_ref[...],
                 preferred_element_type=jnp.float32) + bq_ca_ref[...]
    km = kmem_ref[0]                                     # (S, D) bf16
    vm = vmem_ref[0]
    s2 = lax.dot_general(q2.astype(jnp.bfloat16), km, (((1,), (1,)), ((), ())),
                         preferred_element_type=jnp.float32) * scale  # (1, S)
    s2 = s2 - jnp.max(s2, axis=-1, keepdims=True)
    p2 = jnp.exp(s2)
    p2 = p2 / jnp.sum(p2, axis=-1, keepdims=True)
    attn2 = jnp.dot(p2.astype(jnp.bfloat16), vm, preferred_element_type=jnp.float32)
    o2 = jnp.dot(attn2.astype(jnp.bfloat16), wo_ca_ref[...],
                 preferred_element_type=jnp.float32) + bo_ca_ref[...]
    y = _ln_f32(y + o2, g2_ref[...], b2_ref[...], eps)

    # --- FFN ---
    h = jnp.dot(y.astype(jnp.bfloat16), w1_ref[...],
                preferred_element_type=jnp.float32) + c1_ref[...]
    h = jnp.maximum(h, 0.0)
    z = jnp.dot(h.astype(jnp.bfloat16), w2_ref[...],
                preferred_element_type=jnp.float32) + c2_ref[...]
    y = _ln_f32(y + z, g3_ref[...], b3_ref[...], eps)
    y_ref[0] = y.astype(jnp.bfloat16)


def _logits_argmax_kernel(x_ref, g_ref, b_ref, w_ref, tok_ref,
                          y_scr, best_v, best_i, *, vocab, vblk, eps):
    """Final decoder LayerNorm + fc + argmax; vocab streamed in lane blocks."""
    j = pl.program_id(0)

    @pl.when(j == 0)
    def _():
        x = x_ref[...].astype(jnp.float32)               # (B, D)
        y_scr[...] = _ln_f32(x, g_ref[...], b_ref[...], eps).astype(jnp.bfloat16)
        best_v[...] = jnp.full_like(best_v, -jnp.inf)
        best_i[...] = jnp.zeros_like(best_i)

    logits = jnp.dot(y_scr[...], w_ref[...],
                     preferred_element_type=jnp.float32)  # (B, vblk)
    col = lax.broadcasted_iota(jnp.int32, logits.shape, 1) + j * vblk
    logits = jnp.where(col < vocab, logits, -jnp.inf)
    m = jnp.max(logits, axis=-1, keepdims=True)           # (B, 1)
    idx = jnp.min(jnp.where(logits == m, col, jnp.int32(2147483647)),
                  axis=-1, keepdims=True)                  # first occurrence
    better = m > best_v[...]
    best_i[...] = jnp.where(better, idx, best_i[...])
    best_v[...] = jnp.where(better, m, best_v[...])

    @pl.when(j == pl.num_programs(0) - 1)
    def _():
        tok_ref[...] = best_i[...]


# ----------------------------- kernel wrappers ------------------------------

def enc_layer(x, lp, *, B, S, D):
    scale = 1.0 / math.sqrt(D)
    cost = pl.CostEstimate(
        flops=2 * B * S * D * 12 * D + 4 * B * S * S * D,
        transcendentals=B * S * S,
        bytes_accessed=2 * 2 * B * S * D + 2 * 13 * D * D)
    const = lambda b: (0, 0)
    return pl.pallas_call(
        functools.partial(_enc_layer_kernel, D=D, scale=scale, eps=_EPS),
        grid=(B,),
        in_specs=[
            pl.BlockSpec((1, S, D), lambda b: (b, 0, 0)),
            pl.BlockSpec((D, 3 * D), const), pl.BlockSpec((1, 3 * D), const),
            pl.BlockSpec((D, D), const), pl.BlockSpec((1, D), const),
            pl.BlockSpec((1, D), const), pl.BlockSpec((1, D), const),
            pl.BlockSpec((D, 4 * D), const), pl.BlockSpec((1, 4 * D), const),
            pl.BlockSpec((4 * D, D), const), pl.BlockSpec((1, D), const),
            pl.BlockSpec((1, D), const), pl.BlockSpec((1, D), const),
        ],
        out_specs=pl.BlockSpec((1, S, D), lambda b: (b, 0, 0)),
        out_shape=jax.ShapeDtypeStruct((B, S, D), jnp.bfloat16),
        compiler_params=pltpu.CompilerParams(
            dimension_semantics=("parallel",), vmem_limit_bytes=_VMEM_LIMIT),
        cost_estimate=cost,
    )(x, lp["wqkv"], lp["bqkv"], lp["wo"], lp["bo"], lp["ln1_g"], lp["ln1_b"],
      lp["w1"], lp["c1"], lp["w2"], lp["c2"], lp["ln2_g"], lp["ln2_b"])


def mem_kv(mem, enc_g, enc_b, cap, *, B, S, D):
    const = lambda b: (0, 0)
    return pl.pallas_call(
        functools.partial(_mem_kv_kernel, D=D, eps=_EPS),
        grid=(B,),
        in_specs=[
            pl.BlockSpec((1, S, D), lambda b: (b, 0, 0)),
            pl.BlockSpec((1, D), const), pl.BlockSpec((1, D), const),
            pl.BlockSpec((D, 2 * D), const), pl.BlockSpec((1, 2 * D), const),
        ],
        out_specs=[pl.BlockSpec((1, S, D), lambda b: (b, 0, 0)),
                   pl.BlockSpec((1, S, D), lambda b: (b, 0, 0))],
        out_shape=(jax.ShapeDtypeStruct((B, S, D), jnp.bfloat16),
                   jax.ShapeDtypeStruct((B, S, D), jnp.bfloat16)),
        compiler_params=pltpu.CompilerParams(
            dimension_semantics=("parallel",), vmem_limit_bytes=_VMEM_LIMIT),
    )(mem, enc_g, enc_b, cap["wkv"], cap["bkv"])


def dec_layer_step(x, kc, vc, kmem, vmem, lp, i_arr, *, B, Tdec, S, D):
    scale = 1.0 / math.sqrt(D)
    const = lambda b, i: (0, 0)
    bat3 = lambda b, i: (b, 0, 0)
    cost = pl.CostEstimate(
        flops=B * (28 * D * D + 4 * D * (Tdec + S)),
        transcendentals=B * (Tdec + S),
        bytes_accessed=2 * 15 * D * D + 2 * B * (4 * Tdec * D + 2 * S * D + 2 * D))
    gs = pltpu.PrefetchScalarGridSpec(
        num_scalar_prefetch=1,
        grid=(B,),
        in_specs=[
            pl.BlockSpec((1, 1, D), bat3),           # x (new token)
            pl.BlockSpec((1, Tdec, D), bat3),        # self-attn K cache
            pl.BlockSpec((1, Tdec, D), bat3),        # self-attn V cache
            pl.BlockSpec((1, S, D), bat3),           # memory K cache
            pl.BlockSpec((1, S, D), bat3),           # memory V cache
            pl.BlockSpec((D, 3 * D), const), pl.BlockSpec((1, 3 * D), const),
            pl.BlockSpec((D, D), const), pl.BlockSpec((1, D), const),
            pl.BlockSpec((1, D), const), pl.BlockSpec((1, D), const),
            pl.BlockSpec((D, D), const), pl.BlockSpec((1, D), const),
            pl.BlockSpec((D, D), const), pl.BlockSpec((1, D), const),
            pl.BlockSpec((1, D), const), pl.BlockSpec((1, D), const),
            pl.BlockSpec((D, 4 * D), const), pl.BlockSpec((1, 4 * D), const),
            pl.BlockSpec((4 * D, D), const), pl.BlockSpec((1, D), const),
            pl.BlockSpec((1, D), const), pl.BlockSpec((1, D), const),
        ],
        out_specs=[
            pl.BlockSpec((1, 1, D), bat3),
            pl.BlockSpec((1, Tdec, D), bat3),
            pl.BlockSpec((1, Tdec, D), bat3),
        ],
    )
    return pl.pallas_call(
        functools.partial(_dec_layer_step_kernel, Tdec=Tdec, D=D,
                          scale=scale, eps=_EPS),
        grid_spec=gs,
        out_shape=(jax.ShapeDtypeStruct((B, 1, D), jnp.bfloat16),
                   jax.ShapeDtypeStruct((B, Tdec, D), jnp.bfloat16),
                   jax.ShapeDtypeStruct((B, Tdec, D), jnp.bfloat16)),
        compiler_params=pltpu.CompilerParams(
            dimension_semantics=("parallel",), vmem_limit_bytes=_VMEM_LIMIT),
        cost_estimate=cost,
    )(i_arr, x, kc, vc, kmem, vmem,
      lp["sa_wqkv"], lp["sa_bqkv"], lp["sa_wo"], lp["sa_bo"],
      lp["ln1_g"], lp["ln1_b"],
      lp["ca_wq"], lp["ca_bq"], lp["ca_wo"], lp["ca_bo"],
      lp["ln2_g"], lp["ln2_b"],
      lp["w1"], lp["c1"], lp["w2"], lp["c2"], lp["ln3_g"], lp["ln3_b"])


def logits_argmax(x, g, b, fc_pad, *, vocab):
    Bsz, D = x.shape
    vpad = fc_pad.shape[1]
    vblk = min(vpad, _VOCAB_BLK)
    nblk = vpad // vblk
    tok = pl.pallas_call(
        functools.partial(_logits_argmax_kernel, vocab=vocab, vblk=vblk, eps=_EPS),
        grid=(nblk,),
        in_specs=[
            pl.BlockSpec((Bsz, D), lambda j: (0, 0)),
            pl.BlockSpec((1, D), lambda j: (0, 0)),
            pl.BlockSpec((1, D), lambda j: (0, 0)),
            pl.BlockSpec((D, vblk), lambda j: (0, j)),
        ],
        out_specs=pl.BlockSpec((Bsz, 1), lambda j: (0, 0)),
        out_shape=jax.ShapeDtypeStruct((Bsz, 1), jnp.int32),
        scratch_shapes=[pltpu.VMEM((Bsz, D), jnp.bfloat16),
                        pltpu.VMEM((Bsz, 1), jnp.float32),
                        pltpu.VMEM((Bsz, 1), jnp.int32)],
        compiler_params=pltpu.CompilerParams(
            dimension_semantics=("arbitrary",), vmem_limit_bytes=_VMEM_LIMIT),
    )(x, g, b, fc_pad)
    return tok[:, 0]


# ----------------------------- forward pass --------------------------------

def transformer_decoder_forward(src, seq_size, params):
    """Reproduces TransformerDecoder.forward(src, seq_size) (greedy decode)."""
    B, D, H, W = src.shape
    S = H * W

    # ---- encoder (runs once) ----
    x = src.reshape(B, D, S).transpose(0, 2, 1)                     # (B, S, D)
    x = (x + params["enc_scale"] * params["pe"][None, :S, :]).astype(jnp.bfloat16)
    for lp in params["enc_layers"]:
        x = enc_layer(x, lp, B=B, S=S, D=D)
    mem = x                                                         # pre final-norm

    # ---- cross-attention K/V caches (constant over decode steps) ----
    cross_kv = [mem_kv(mem, params["enc_norm_g"], params["enc_norm_b"], lp["ca"],
                       B=B, S=S, D=D)
                for lp in params["dec_layers"]]

    # ---- greedy decode with a decoder self-attention K/V cache ----
    Tdec = max(16, _round_up(seq_size, 16))
    pe_dec = params["pe"][:Tdec]
    emb_table = params["embedding"]
    vocab = emb_table.shape[0]
    n_dec = len(params["dec_layers"])

    cache0 = jnp.zeros((B, Tdec, D), jnp.bfloat16)
    caches0 = tuple((cache0, cache0) for _ in range(n_dec))
    trg0 = jnp.zeros((B, Tdec), jnp.int32).at[:, 0].set(1)

    def step(i, carry):
        trg, caches = carry
        tok_i = lax.dynamic_slice_in_dim(trg, i, 1, axis=1)[:, 0]        # (B,)
        xi = jnp.take(emb_table, tok_i, axis=0)                          # (B, D)
        pe_i = lax.dynamic_slice_in_dim(pe_dec, i, 1, axis=0)            # (1, D)
        xi = (xi + params["dec_scale"] * pe_i).astype(jnp.bfloat16)[:, None, :]
        i_arr = jnp.full((1,), i, jnp.int32)
        new_caches = []
        for li, lp in enumerate(params["dec_layers"]):
            kc, vc = caches[li]
            kmem, vmem = cross_kv[li]
            xi, kc, vc = dec_layer_step(xi, kc, vc, kmem, vmem, lp, i_arr,
                                        B=B, Tdec=Tdec, S=S, D=D)
            new_caches.append((kc, vc))
        tok = logits_argmax(xi.reshape(B, D), params["dec_norm_g"],
                            params["dec_norm_b"], params["fc_pad"], vocab=vocab)
        trg = lax.dynamic_update_index_in_dim(trg, tok, i + 1, axis=1)
        return trg, tuple(new_caches)

    trg, _ = lax.fori_loop(0, seq_size - 1, step, (trg0, caches0))
    return trg[:, :seq_size]                                             # (B, seq)


# ----------------------------- parameter init ------------------------------

def _normal(key, shape, std):
    return std * jax.random.normal(key, shape, dtype=jnp.float32)


def make_pe(max_len, d_model):
    pos = jnp.arange(max_len, dtype=jnp.float32)[:, None]
    div = jnp.exp(jnp.arange(0, d_model, 2, dtype=jnp.float32)
                  * (-math.log(10000.0) / d_model))
    pe = jnp.zeros((max_len, d_model), jnp.float32)
    pe = pe.at[:, 0::2].set(jnp.sin(pos * div))
    pe = pe.at[:, 1::2].set(jnp.cos(pos * div))
    return pe


def _norm_params(d):
    return jnp.ones((1, d), jnp.float32), jnp.zeros((1, d), jnp.float32)


def _self_attn_params(key, d):
    k1, k2 = jax.random.split(key)
    in_w = _normal(k1, (3 * d, d), 0.02)                 # torch in_proj layout
    out_w = _normal(k2, (d, d), 0.02)
    return dict(wqkv=in_w.T.astype(jnp.bfloat16),        # fused (d, 3d)
                bqkv=jnp.zeros((1, 3 * d), jnp.float32),
                wo=out_w.T.astype(jnp.bfloat16),
                bo=jnp.zeros((1, d), jnp.float32))


def _cross_attn_params(key, d):
    k1, k2 = jax.random.split(key)
    in_w = _normal(k1, (3 * d, d), 0.02)
    wq, wk, wv = jnp.split(in_w, 3, axis=0)
    out_w = _normal(k2, (d, d), 0.02)
    return dict(wq=wq.T.astype(jnp.bfloat16),
                bq=jnp.zeros((1, d), jnp.float32),
                wkv=jnp.concatenate([wk.T, wv.T], axis=1).astype(jnp.bfloat16),
                bkv=jnp.zeros((1, 2 * d), jnp.float32),
                wo=out_w.T.astype(jnp.bfloat16),
                bo=jnp.zeros((1, d), jnp.float32))


def init_enc_layer(key, d):
    k1, k2, k3 = jax.random.split(key, 3)
    sa = _self_attn_params(k1, d)
    g1, b1 = _norm_params(d)
    g2, b2 = _norm_params(d)
    return dict(
        wqkv=sa["wqkv"], bqkv=sa["bqkv"], wo=sa["wo"], bo=sa["bo"],
        ln1_g=g1, ln1_b=b1,
        w1=_normal(k2, (4 * d, d), 0.02).T.astype(jnp.bfloat16),
        c1=jnp.zeros((1, 4 * d), jnp.float32),
        w2=_normal(k3, (d, 4 * d), 0.02).T.astype(jnp.bfloat16),
        c2=jnp.zeros((1, d), jnp.float32),
        ln2_g=g2, ln2_b=b2)


def init_dec_layer(key, d):
    k1, k2, k3, k4 = jax.random.split(key, 4)
    sa = _self_attn_params(k1, d)
    ca = _cross_attn_params(k2, d)
    g1, b1 = _norm_params(d)
    g2, b2 = _norm_params(d)
    g3, b3 = _norm_params(d)
    return dict(
        sa_wqkv=sa["wqkv"], sa_bqkv=sa["bqkv"], sa_wo=sa["wo"], sa_bo=sa["bo"],
        ca=dict(wkv=ca["wkv"], bkv=ca["bkv"]),
        ca_wq=ca["wq"], ca_bq=ca["bq"], ca_wo=ca["wo"], ca_bo=ca["bo"],
        ln1_g=g1, ln1_b=b1, ln2_g=g2, ln2_b=b2, ln3_g=g3, ln3_b=b3,
        w1=_normal(k3, (4 * d, d), 0.02).T.astype(jnp.bfloat16),
        c1=jnp.zeros((1, 4 * d), jnp.float32),
        w2=_normal(k4, (d, 4 * d), 0.02).T.astype(jnp.bfloat16),
        c2=jnp.zeros((1, d), jnp.float32))


def init_params(key, d, vocab, enc_layers=1, dec_layers=1, max_len=5000):
    keys = jax.random.split(key, enc_layers + dec_layers + 2)
    vpad = _padded_vocab(vocab)
    fc_w = _normal(keys[-1], (vocab, d), 0.01)           # fc (bias=False)
    fc_pad = jnp.zeros((d, vpad), jnp.float32).at[:, :vocab].set(fc_w.T)
    eg, eb = _norm_params(d)
    dg, db = _norm_params(d)
    return dict(
        pe=make_pe(max_len, d),
        enc_scale=jnp.float32(1.0),                      # PositionalEncoding.scale
        dec_scale=jnp.float32(1.0),
        enc_layers=[init_enc_layer(keys[i], d) for i in range(enc_layers)],
        dec_layers=[init_dec_layer(keys[enc_layers + i], d)
                    for i in range(dec_layers)],
        enc_norm_g=eg, enc_norm_b=eb,
        dec_norm_g=dg, dec_norm_b=db,
        embedding=_normal(keys[-2], (vocab, d), 1.0),    # nn.Embedding
        fc_pad=fc_pad.astype(jnp.bfloat16))


# --------------------------------- main -------------------------------------

if __name__ == "__main__":
    # Small shapes: batch=2, hidden=32, spatial 4x4 -> memory seq len 16,
    # vocab=16, greedy decode seq_size=5.
    B, D, H, W = 2, 32, 4, 4
    VOCAB = 16
    SEQ_SIZE = 5

    key = jax.random.PRNGKey(0)
    k_src, k_par = jax.random.split(key)
    src = jax.random.normal(k_src, (B, D, H, W), dtype=jnp.float32)
    params = init_params(k_par, D, VOCAB)

    fwd = jax.jit(transformer_decoder_forward, static_argnums=1)
    tokens = fwd(src, SEQ_SIZE, params)
    tokens = jax.block_until_ready(tokens)
    assert tokens.shape == (B, SEQ_SIZE)
    assert tokens.dtype == jnp.int32
    print("KERNEL_OK")
</pallas_src>

<mosaic_0001>
module attributes {stable_mosaic.version = 11 : i64} {
  func.func @_enc_layer_kernel(%arg0: i32, %arg1: memref<1x16x32xbf16, #tpu.memory_space<vmem>>, %arg2: memref<32x96xbf16, #tpu.memory_space<vmem>>, %arg3: memref<1x96xf32, #tpu.memory_space<vmem>>, %arg4: memref<32x32xbf16, #tpu.memory_space<vmem>>, %arg5: memref<1x32xf32, #tpu.memory_space<vmem>>, %arg6: memref<1x32xf32, #tpu.memory_space<vmem>>, %arg7: memref<1x32xf32, #tpu.memory_space<vmem>>, %arg8: memref<32x128xbf16, #tpu.memory_space<vmem>>, %arg9: memref<1x128xf32, #tpu.memory_space<vmem>>, %arg10: memref<128x32xbf16, #tpu.memory_space<vmem>>, %arg11: memref<1x32xf32, #tpu.memory_space<vmem>>, %arg12: memref<1x32xf32, #tpu.memory_space<vmem>>, %arg13: memref<1x32xf32, #tpu.memory_space<vmem>>, %arg14: memref<1x16x32xbf16, #tpu.memory_space<vmem>>) attributes {dimension_semantics = [#tpu.dimension_semantics<parallel>], iteration_bounds = array<i64: 2>, scalar_prefetch = 0 : i64, scratch_operands = 0 : i64, tpu.core_type = #tpu.core_type<tc>, window_params = [{transform_indices = @transform_0, window_bounds = array<i64: 1, 16, 32>}, {pipeline_mode = #tpu.pipeline_mode<synchronous>, transform_indices = @transform_1, window_bounds = array<i64: 32, 96>}, {pipeline_mode = #tpu.pipeline_mode<synchronous>, transform_indices = @transform_2, window_bounds = array<i64: 1, 96>}, {pipeline_mode = #tpu.pipeline_mode<synchronous>, transform_indices = @transform_3, window_bounds = array<i64: 32, 32>}, {pipeline_mode = #tpu.pipeline_mode<synchronous>, transform_indices = @transform_4, window_bounds = array<i64: 1, 32>}, {pipeline_mode = #tpu.pipeline_mode<synchronous>, transform_indices = @transform_5, window_bounds = array<i64: 1, 32>}, {pipeline_mode = #tpu.pipeline_mode<synchronous>, transform_indices = @transform_6, window_bounds = array<i64: 1, 32>}, {pipeline_mode = #tpu.pipeline_mode<synchronous>, transform_indices = @transform_7, window_bounds = array<i64: 32, 128>}, {pipeline_mode = #tpu.pipeline_mode<synchronous>, transform_indices = @transform_8, window_bounds = array<i64: 1, 128>}, {pipeline_mode = #tpu.pipeline_mode<synchronous>, transform_indices = @transform_9, window_bounds = array<i64: 128, 32>}, {pipeline_mode = #tpu.pipeline_mode<synchronous>, transform_indices = @transform_10, window_bounds = array<i64: 1, 32>}, {pipeline_mode = #tpu.pipeline_mode<synchronous>, transform_indices = @transform_11, window_bounds = array<i64: 1, 32>}, {pipeline_mode = #tpu.pipeline_mode<synchronous>, transform_indices = @transform_12, window_bounds = array<i64: 1, 32>}, {transform_indices = @transform_13, window_bounds = array<i64: 1, 16, 32>}]} {
    %c0 = arith.constant 0 : index
    %c0_0 = arith.constant 0 : index
    %c0_1 = arith.constant 0 : index
    %0 = vector.load %arg1[%c0, %c0_0, %c0_1] : memref<1x16x32xbf16, #tpu.memory_space<vmem>>, vector<1x16x32xbf16>
    %1 = vector.shape_cast %0 : vector<1x16x32xbf16> to vector<16x32xbf16>
    %2 = arith.extf %1 : vector<16x32xbf16> to vector<16x32xf32>
    %c0_2 = arith.constant 0 : index
    %c0_3 = arith.constant 0 : index
    %3 = vector.load %arg2[%c0_2, %c0_3] : memref<32x96xbf16, #tpu.memory_space<vmem>>, vector<32x96xbf16>
    %cst = arith.constant dense<0.000000e+00> : vector<16x96xf32>
    %4 = tpu.matmul %1, %3, %cst {dimension_numbers = #tpu.dot_dimension_numbers<[1], [0], [0], [1], [0, 0, 1, 1], [], []>} : vector<16x32xbf16>, vector<32x96xbf16>, vector<16x96xf32> -> vector<16x96xf32>
    %c0_4 = arith.constant 0 : index
    %c0_5 = arith.constant 0 : index
    %5 = vector.load %arg3[%c0_4, %c0_5] : memref<1x96xf32, #tpu.memory_space<vmem>>, vector<1x96xf32>
    %6 = vector.broadcast %5 : vector<1x96xf32> to vector<16x96xf32>
    %7 = arith.addf %4, %6 : vector<16x96xf32>
    %8 = vector.extract_strided_slice %7 {offsets = [0, 0], sizes = [16, 32], strides = [1, 1]} : vector<16x96xf32> to vector<16x32xf32>
    %9 = arith.truncf %8 : vector<16x32xf32> to vector<16x32xbf16>
    %10 = vector.extract_strided_slice %7 {offsets = [0, 32], sizes = [16, 32], strides = [1, 1]} : vector<16x96xf32> to vector<16x32xf32>
    %11 = arith.truncf %10 : vector<16x32xf32> to vector<16x32xbf16>
    %12 = vector.extract_strided_slice %7 {offsets = [0, 64], sizes = [16, 32], strides = [1, 1]} : vector<16x96xf32> to vector<16x32xf32>
    %13 = arith.truncf %12 : vector<16x32xf32> to vector<16x32xbf16>
    %cst_6 = arith.constant dense<0.000000e+00> : vector<16x16xf32>
    %14 = tpu.matmul %9, %11, %cst_6 {dimension_numbers = #tpu.dot_dimension_numbers<[1], [1], [0], [0], [0, 0, 1, 0], [], []>} : vector<16x32xbf16>, vector<16x32xbf16>, vector<16x16xf32> -> vector<16x16xf32>
    %cst_7 = arith.constant 0.176776692 : f32
    %15 = vector.broadcast %cst_7 : f32 to vector<16x16xf32>
    %16 = arith.mulf %14, %15 : vector<16x16xf32>
    %cst_8 = arith.constant dense<0xFF800000> : vector<16xf32>
    %17 = vector.multi_reduction <maximumf>, %16, %cst_8 [1] : vector<16x16xf32> to vector<16xf32>
    %18 = vector.shape_cast %17 : vector<16xf32> to vector<16x1xf32>
    %19 = vector.broadcast %18 : vector<16x1xf32> to vector<16x16xf32>
    %20 = arith.subf %16, %19 : vector<16x16xf32>
    %21 = math.exp %20 : vector<16x16xf32>
    %cst_9 = arith.constant dense<0.000000e+00> : vector<16xf32>
    %22 = vector.multi_reduction <add>, %21, %cst_9 [1] : vector<16x16xf32> to vector<16xf32>
    %23 = vector.shape_cast %22 : vector<16xf32> to vector<16x1xf32>
    %24 = vector.broadcast %23 : vector<16x1xf32> to vector<16x16xf32>
    %25 = arith.divf %21, %24 : vector<16x16xf32>
    %26 = arith.truncf %25 : vector<16x16xf32> to vector<16x16xbf16>
    %cst_10 = arith.constant dense<0.000000e+00> : vector<16x32xf32>
    %27 = tpu.matmul %26, %13, %cst_10 {dimension_numbers = #tpu.dot_dimension_numbers<[1], [0], [0], [1], [0, 0, 1, 1], [], []>} : vector<16x16xbf16>, vector<16x32xbf16>, vector<16x32xf32> -> vector<16x32xf32>
    %28 = arith.truncf %27 : vector<16x32xf32> to vector<16x32xbf16>
    %c0_11 = arith.constant 0 : index
    %c0_12 = arith.constant 0 : index
    %29 = vector.load %arg4[%c0_11, %c0_12] : memref<32x32xbf16, #tpu.memory_space<vmem>>, vector<32x32xbf16>
    %cst_13 = arith.constant dense<0.000000e+00> : vector<16x32xf32>
    %30 = tpu.matmul %28, %29, %cst_13 {dimension_numbers = #tpu.dot_dimension_numbers<[1], [0], [0], [1], [0, 0, 1, 1], [], []>} : vector<16x32xbf16>, vector<32x32xbf16>, vector<16x32xf32> -> vector<16x32xf32>
    %c0_14 = arith.constant 0 : index
    %c0_15 = arith.constant 0 : index
    %31 = vector.load %arg5[%c0_14, %c0_15] : memref<1x32xf32, #tpu.memory_space<vmem>>, vector<1x32xf32>
    %32 = vector.broadcast %31 : vector<1x32xf32> to vector<16x32xf32>
    %33 = arith.addf %30, %32 : vector<16x32xf32>
    %34 = arith.addf %2, %33 : vector<16x32xf32>
    %c0_16 = arith.constant 0 : index
    %c0_17 = arith.constant 0 : index
    %35 = vector.load %arg6[%c0_16, %c0_17] : memref<1x32xf32, #tpu.memory_space<vmem>>, vector<1x32xf32>
    %c0_18 = arith.constant 0 : index
    %c0_19 = arith.constant 0 : index
    %36 = vector.load %arg7[%c0_18, %c0_19] : memref<1x32xf32, #tpu.memory_space<vmem>>, vector<1x32xf32>
    %cst_20 = arith.constant dense<0.000000e+00> : vector<16xf32>
    %37 = vector.multi_reduction <add>, %34, %cst_20 [1] : vector<16x32xf32> to vector<16xf32>
    %38 = vector.shape_cast %37 : vector<16xf32> to vector<16x1xf32>
    %cst_21 = arith.constant 3.200000e+01 : f32
    %39 = vector.broadcast %cst_21 : f32 to vector<16x1xf32>
    %40 = arith.divf %38, %39 : vector<16x1xf32>
    %41 = vector.broadcast %40 : vector<16x1xf32> to vector<16x32xf32>
    %42 = arith.subf %34, %41 : vector<16x32xf32>
    %43 = arith.mulf %42, %42 : vector<16x32xf32>
    %cst_22 = arith.constant dense<0.000000e+00> : vector<16xf32>
    %44 = vector.multi_reduction <add>, %43, %cst_22 [1] : vector<16x32xf32> to vector<16xf32>
    %45 = vector.shape_cast %44 : vector<16xf32> to vector<16x1xf32>
    %cst_23 = arith.constant 3.200000e+01 : f32
    %46 = vector.broadcast %cst_23 : f32 to vector<16x1xf32>
    %47 = arith.divf %45, %46 : vector<16x1xf32>
    %cst_24 = arith.constant 9.99999974E-6 : f32
    %48 = vector.broadcast %cst_24 : f32 to vector<16x1xf32>
    %49 = arith.addf %47, %48 : vector<16x1xf32>
    %50 = math.rsqrt %49 : vector<16x1xf32>
    %51 = vector.broadcast %50 : vector<16x1xf32> to vector<16x32xf32>
    %52 = arith.mulf %42, %51 : vector<16x32xf32>
    %53 = vector.broadcast %35 : vector<1x32xf32> to vector<16x32xf32>
    %54 = arith.mulf %52, %53 : vector<16x32xf32>
    %55 = vector.broadcast %36 : vector<1x32xf32> to vector<16x32xf32>
    %56 = arith.addf %54, %55 : vector<16x32xf32>
    %57 = arith.truncf %56 : vector<16x32xf32> to vector<16x32xbf16>
    %c0_25 = arith.constant 0 : index
    %c0_26 = arith.constant 0 : index
    %58 = vector.load %arg8[%c0_25, %c0_26] : memref<32x128xbf16, #tpu.memory_space<vmem>>, vector<32x128xbf16>
    %cst_27 = arith.constant dense<0.000000e+00> : vector<16x128xf32>
    %59 = tpu.matmul %57, %58, %cst_27 {dimension_numbers = #tpu.dot_dimension_numbers<[1], [0], [0], [1], [0, 0, 1, 1], [], []>} : vector<16x32xbf16>, vector<32x128xbf16>, vector<16x128xf32> -> vector<16x128xf32>
    %c0_28 = arith.constant 0 : index
    %c0_29 = arith.constant 0 : index
    %60 = vector.load %arg9[%c0_28, %c0_29] : memref<1x128xf32, #tpu.memory_space<vmem>>, vector<1x128xf32>
    %61 = vector.broadcast %60 : vector<1x128xf32> to vector<16x128xf32>
    %62 = arith.addf %59, %61 : vector<16x128xf32>
    %cst_30 = arith.constant 0.000000e+00 : f32
    %63 = vector.broadcast %cst_30 : f32 to vector<16x128xf32>
    %64 = arith.maximumf %62, %63 : vector<16x128xf32>
    %65 = arith.truncf %64 : vector<16x128xf32> to vector<16x128xbf16>
    %c0_31 = arith.constant 0 : index
    %c0_32 = arith.constant 0 : index
    %66 = vector.load %arg10[%c0_31, %c0_32] : memref<128x32xbf16, #tpu.memory_space<vmem>>, vector<128x32xbf16>
    %cst_33 = arith.constant dense<0.000000e+00> : vector<16x32xf32>
    %67 = tpu.matmul %65, %66, %cst_33 {dimension_numbers = #tpu.dot_dimension_numbers<[1], [0], [0], [1], [0, 0, 1, 1], [], []>} : vector<16x128xbf16>, vector<128x32xbf16>, vector<16x32xf32> -> vector<16x32xf32>
    %c0_34 = arith.constant 0 : index
    %c0_35 = arith.constant 0 : index
    %68 = vector.load %arg11[%c0_34, %c0_35] : memref<1x32xf32, #tpu.memory_space<vmem>>, vector<1x32xf32>
    %69 = vector.broadcast %68 : vector<1x32xf32> to vector<16x32xf32>
    %70 = arith.addf %67, %69 : vector<16x32xf32>
    %71 = arith.addf %56, %70 : vector<16x32xf32>
    %c0_36 = arith.constant 0 : index
    %c0_37 = arith.constant 0 : index
    %72 = vector.load %arg12[%c0_36, %c0_37] : memref<1x32xf32, #tpu.memory_space<vmem>>, vector<1x32xf32>
    %c0_38 = arith.constant 0 : index
    %c0_39 = arith.constant 0 : index
    %73 = vector.load %arg13[%c0_38, %c0_39] : memref<1x32xf32, #tpu.memory_space<vmem>>, vector<1x32xf32>
    %cst_40 = arith.constant dense<0.000000e+00> : vector<16xf32>
    %74 = vector.multi_reduction <add>, %71, %cst_40 [1] : vector<16x32xf32> to vector<16xf32>
    %75 = vector.shape_cast %74 : vector<16xf32> to vector<16x1xf32>
    %cst_41 = arith.constant 3.200000e+01 : f32
    %76 = vector.broadcast %cst_41 : f32 to vector<16x1xf32>
    %77 = arith.divf %75, %76 : vector<16x1xf32>
    %78 = vector.broadcast %77 : vector<16x1xf32> to vector<16x32xf32>
    %79 = arith.subf %71, %78 : vector<16x32xf32>
    %80 = arith.mulf %79, %79 : vector<16x32xf32>
    %cst_42 = arith.constant dense<0.000000e+00> : vector<16xf32>
    %81 = vector.multi_reduction <add>, %80, %cst_42 [1] : vector<16x32xf32> to vector<16xf32>
    %82 = vector.shape_cast %81 : vector<16xf32> to vector<16x1xf32>
    %cst_43 = arith.constant 3.200000e+01 : f32
    %83 = vector.broadcast %cst_43 : f32 to vector<16x1xf32>
    %84 = arith.divf %82, %83 : vector<16x1xf32>
    %cst_44 = arith.constant 9.99999974E-6 : f32
    %85 = vector.broadcast %cst_44 : f32 to vector<16x1xf32>
    %86 = arith.addf %84, %85 : vector<16x1xf32>
    %87 = math.rsqrt %86 : vector<16x1xf32>
    %88 = vector.broadcast %87 : vector<16x1xf32> to vector<16x32xf32>
    %89 = arith.mulf %79, %88 : vector<16x32xf32>
    %90 = vector.broadcast %72 : vector<1x32xf32> to vector<16x32xf32>
    %91 = arith.mulf %89, %90 : vector<16x32xf32>
    %92 = vector.broadcast %73 : vector<1x32xf32> to vector<16x32xf32>
    %93 = arith.addf %91, %92 : vector<16x32xf32>
    %94 = arith.truncf %93 : vector<16x32xf32> to vector<16x32xbf16>
    %c0_45 = arith.constant 0 : index
    %c0_46 = arith.constant 0 : index
    %c0_47 = arith.constant 0 : index
    %95 = vector.load %arg14[%c0_45, %c0_46, %c0_47] : memref<1x16x32xbf16, #tpu.memory_space<vmem>>, vector<1x16x32xbf16>
    %96 = vector.shape_cast %95 : vector<1x16x32xbf16> to vector<16x32xbf16>
    %97 = vector.shape_cast %94 : vector<16x32xbf16> to vector<1x16x32xbf16>
    tpu.vector_store %arg14[%c0_45, %c0_46, %c0_47], %97 {strides = array<i32>} : memref<1x16x32xbf16, #tpu.memory_space<vmem>>, vector<1x16x32xbf16>,
    return
  }
  func.func @transform_0(%arg0: i32) -> (i32, i32, i32) {
    %c0_i32 = arith.constant 0 : i32
    %c0_i32_0 = arith.constant 0 : i32
    %c0_i32_1 = arith.constant 0 : i32
    return %arg0, %c0_i32, %c0_i32_0 : i32, i32, i32
  }
  func.func @transform_1(%arg0: i32) -> (i32, i32) {
    %c0_i32 = arith.constant 0 : i32
    %c0_i32_0 = arith.constant 0 : i32
    %c0_i32_1 = arith.constant 0 : i32
    return %c0_i32, %c0_i32_0 : i32, i32
  }
  func.func @transform_2(%arg0: i32) -> (i32, i32) {
    %c0_i32 = arith.constant 0 : i32
    %c0_i32_0 = arith.constant 0 : i32
    %c0_i32_1 = arith.constant 0 : i32
    return %c0_i32, %c0_i32_0 : i32, i32
  }
  func.func @transform_3(%arg0: i32) -> (i32, i32) {
    %c0_i32 = arith.constant 0 : i32
    %c0_i32_0 = arith.constant 0 : i32
    %c0_i32_1 = arith.constant 0 : i32
    return %c0_i32, %c0_i32_0 : i32, i32
  }
  func.func @transform_4(%arg0: i32) -> (i32, i32) {
    %c0_i32 = arith.constant 0 : i32
    %c0_i32_0 = arith.constant 0 : i32
    %c0_i32_1 = arith.constant 0 : i32
    return %c0_i32, %c0_i32_0 : i32, i32
  }
  func.func @transform_5(%arg0: i32) -> (i32, i32) {
    %c0_i32 = arith.constant 0 : i32
    %c0_i32_0 = arith.constant 0 : i32
    %c0_i32_1 = arith.constant 0 : i32
    return %c0_i32, %c0_i32_0 : i32, i32
  }
  func.func @transform_6(%arg0: i32) -> (i32, i32) {
    %c0_i32 = arith.constant 0 : i32
    %c0_i32_0 = arith.constant 0 : i32
    %c0_i32_1 = arith.constant 0 : i32
    return %c0_i32, %c0_i32_0 : i32, i32
  }
  func.func @transform_7(%arg0: i32) -> (i32, i32) {
    %c0_i32 = arith.constant 0 : i32
    %c0_i32_0 = arith.constant 0 : i32
    %c0_i32_1 = arith.constant 0 : i32
    return %c0_i32, %c0_i32_0 : i32, i32
  }
  func.func @transform_8(%arg0: i32) -> (i32, i32) {
    %c0_i32 = arith.constant 0 : i32
    %c0_i32_0 = arith.constant 0 : i32
    %c0_i32_1 = arith.constant 0 : i32
    return %c0_i32, %c0_i32_0 : i32, i32
  }
  func.func @transform_9(%arg0: i32) -> (i32, i32) {
    %c0_i32 = arith.constant 0 : i32
    %c0_i32_0 = arith.constant 0 : i32
    %c0_i32_1 = arith.constant 0 : i32
    return %c0_i32, %c0_i32_0 : i32, i32
  }
  func.func @transform_10(%arg0: i32) -> (i32, i32) {
    %c0_i32 = arith.constant 0 : i32
    %c0_i32_0 = arith.constant 0 : i32
    %c0_i32_1 = arith.constant 0 : i32
    return %c0_i32, %c0_i32_0 : i32, i32
  }
  func.func @transform_11(%arg0: i32) -> (i32, i32) {
    %c0_i32 = arith.constant 0 : i32
    %c0_i32_0 = arith.constant 0 : i32
    %c0_i32_1 = arith.constant 0 : i32
    return %c0_i32, %c0_i32_0 : i32, i32
  }
  func.func @transform_12(%arg0: i32) -> (i32, i32) {
    %c0_i32 = arith.constant 0 : i32
    %c0_i32_0 = arith.constant 0 : i32
    %c0_i32_1 = arith.constant 0 : i32
    return %c0_i32, %c0_i32_0 : i32, i32
  }
  func.func @transform_13(%arg0: i32) -> (i32, i32, i32) {
    %c0_i32 = arith.constant 0 : i32
    %c0_i32_0 = arith.constant 0 : i32
    %c0_i32_1 = arith.constant 0 : i32
    return %arg0, %c0_i32, %c0_i32_0 : i32, i32, i32
  }
}

module attributes {stable_mosaic.version = 11 : i64} {
  func.func @_mem_kv_kernel(%arg0: i32, %arg1: memref<1x16x32xbf16, #tpu.memory_space<vmem>>, %arg2: memref<1x32xf32, #tpu.memory_space<vmem>>, %arg3: memref<1x32xf32, #tpu.memory_space<vmem>>, %arg4: memref<32x64xbf16, #tpu.memory_space<vmem>>, %arg5: memref<1x64xf32, #tpu.memory_space<vmem>>, %arg6: memref<1x16x32xbf16, #tpu.memory_space<vmem>>, %arg7: memref<1x16x32xbf16, #tpu.memory_space<vmem>>) attributes {dimension_semantics = [#tpu.dimension_semantics<parallel>], iteration_bounds = array<i64: 2>, scalar_prefetch = 0 : i64, scratch_operands = 0 : i64, tpu.core_type = #tpu.core_type<tc>, window_params = [{transform_indices = @transform_0, window_bounds = array<i64: 1, 16, 32>}, {pipeline_mode = #tpu.pipeline_mode<synchronous>, transform_indices = @transform_1, window_bounds = array<i64: 1, 32>}, {pipeline_mode = #tpu.pipeline_mode<synchronous>, transform_indices = @transform_2, window_bounds = array<i64: 1, 32>}, {pipeline_mode = #tpu.pipeline_mode<synchronous>, transform_indices = @transform_3, window_bounds = array<i64: 32, 64>}, {pipeline_mode = #tpu.pipeline_mode<synchronous>, transform_indices = @transform_4, window_bounds = array<i64: 1, 64>}, {transform_indices = @transform_5, window_bounds = array<i64: 1, 16, 32>}, {transform_indices = @transform_6, window_bounds = array<i64: 1, 16, 32>}]} {
    %c0 = arith.constant 0 : index
    %c0_0 = arith.constant 0 : index
    %c0_1 = arith.constant 0 : index
    %0 = vector.load %arg1[%c0, %c0_0, %c0_1] : memref<1x16x32xbf16, #tpu.memory_space<vmem>>, vector<1x16x32xbf16>
    %1 = vector.shape_cast %0 : vector<1x16x32xbf16> to vector<16x32xbf16>
    %2 = arith.extf %1 : vector<16x32xbf16> to vector<16x32xf32>
    %c0_2 = arith.constant 0 : index
    %c0_3 = arith.constant 0 : index
    %3 = vector.load %arg2[%c0_2, %c0_3] : memref<1x32xf32, #tpu.memory_space<vmem>>, vector<1x32xf32>
    %c0_4 = arith.constant 0 : index
    %c0_5 = arith.constant 0 : index
    %4 = vector.load %arg3[%c0_4, %c0_5] : memref<1x32xf32, #tpu.memory_space<vmem>>, vector<1x32xf32>
    %cst = arith.constant dense<0.000000e+00> : vector<16xf32>
    %5 = vector.multi_reduction <add>, %2, %cst [1] : vector<16x32xf32> to vector<16xf32>
    %6 = vector.shape_cast %5 : vector<16xf32> to vector<16x1xf32>
    %cst_6 = arith.constant 3.200000e+01 : f32
    %7 = vector.broadcast %cst_6 : f32 to vector<16x1xf32>
    %8 = arith.divf %6, %7 : vector<16x1xf32>
    %9 = vector.broadcast %8 : vector<16x1xf32> to vector<16x32xf32>
    %10 = arith.subf %2, %9 : vector<16x32xf32>
    %11 = arith.mulf %10, %10 : vector<16x32xf32>
    %cst_7 = arith.constant dense<0.000000e+00> : vector<16xf32>
    %12 = vector.multi_reduction <add>, %11, %cst_7 [1] : vector<16x32xf32> to vector<16xf32>
    %13 = vector.shape_cast %12 : vector<16xf32> to vector<16x1xf32>
    %cst_8 = arith.constant 3.200000e+01 : f32
    %14 = vector.broadcast %cst_8 : f32 to vector<16x1xf32>
    %15 = arith.divf %13, %14 : vector<16x1xf32>
    %cst_9 = arith.constant 9.99999974E-6 : f32
    %16 = vector.broadcast %cst_9 : f32 to vector<16x1xf32>
    %17 = arith.addf %15, %16 : vector<16x1xf32>
    %18 = math.rsqrt %17 : vector<16x1xf32>
    %19 = vector.broadcast %18 : vector<16x1xf32> to vector<16x32xf32>
    %20 = arith.mulf %10, %19 : vector<16x32xf32>
    %21 = vector.broadcast %3 : vector<1x32xf32> to vector<16x32xf32>
    %22 = arith.mulf %20, %21 : vector<16x32xf32>
    %23 = vector.broadcast %4 : vector<1x32xf32> to vector<16x32xf32>
    %24 = arith.addf %22, %23 : vector<16x32xf32>
    %25 = arith.truncf %24 : vector<16x32xf32> to vector<16x32xbf16>
    %c0_10 = arith.constant 0 : index
    %c0_11 = arith.constant 0 : index
    %26 = vector.load %arg4[%c0_10, %c0_11] : memref<32x64xbf16, #tpu.memory_space<vmem>>, vector<32x64xbf16>
    %cst_12 = arith.constant dense<0.000000e+00> : vector<16x64xf32>
    %27 = tpu.matmul %25, %26, %cst_12 {dimension_numbers = #tpu.dot_dimension_numbers<[1], [0], [0], [1], [0, 0, 1, 1], [], []>} : vector<16x32xbf16>, vector<32x64xbf16>, vector<16x64xf32> -> vector<16x64xf32>
    %c0_13 = arith.constant 0 : index
    %c0_14 = arith.constant 0 : index
    %28 = vector.load %arg5[%c0_13, %c0_14] : memref<1x64xf32, #tpu.memory_space<vmem>>, vector<1x64xf32>
    %29 = vector.broadcast %28 : vector<1x64xf32> to vector<16x64xf32>
    %30 = arith.addf %27, %29 : vector<16x64xf32>
    %31 = vector.extract_strided_slice %30 {offsets = [0, 0], sizes = [16, 32], strides = [1, 1]} : vector<16x64xf32> to vector<16x32xf32>
    %32 = arith.truncf %31 : vector<16x32xf32> to vector<16x32xbf16>
    %c0_15 = arith.constant 0 : index
    %c0_16 = arith.constant 0 : index
    %c0_17 = arith.constant 0 : index
    %33 = vector.load %arg6[%c0_15, %c0_16, %c0_17] : memref<1x16x32xbf16, #tpu.memory_space<vmem>>, vector<1x16x32xbf16>
    %34 = vector.shape_cast %33 : vector<1x16x32xbf16> to vector<16x32xbf16>
    %35 = vector.shape_cast %32 : vector<16x32xbf16> to vector<1x16x32xbf16>
    tpu.vector_store %arg6[%c0_15, %c0_16, %c0_17], %35 {strides = array<i32>} : memref<1x16x32xbf16, #tpu.memory_space<vmem>>, vector<1x16x32xbf16>,
    %36 = vector.extract_strided_slice %30 {offsets = [0, 32], sizes = [16, 32], strides = [1, 1]} : vector<16x64xf32> to vector<16x32xf32>
    %37 = arith.truncf %36 : vector<16x32xf32> to vector<16x32xbf16>
    %c0_18 = arith.constant 0 : index
    %c0_19 = arith.constant 0 : index
    %c0_20 = arith.constant 0 : index
    %38 = vector.load %arg7[%c0_18, %c0_19, %c0_20] : memref<1x16x32xbf16, #tpu.memory_space<vmem>>, vector<1x16x32xbf16>
    %39 = vector.shape_cast %38 : vector<1x16x32xbf16> to vector<16x32xbf16>
    %40 = vector.shape_cast %37 : vector<16x32xbf16> to vector<1x16x32xbf16>
    tpu.vector_store %arg7[%c0_18, %c0_19, %c0_20], %40 {strides = array<i32>} : memref<1x16x32xbf16, #tpu.memory_space<vmem>>, vector<1x16x32xbf16>,
    return
  }
  func.func @transform_0(%arg0: i32) -> (i32, i32, i32) {
    %c0_i32 = arith.constant 0 : i32
    %c0_i32_0 = arith.constant 0 : i32
    %c0_i32_1 = arith.constant 0 : i32
    return %arg0, %c0_i32, %c0_i32_0 : i32, i32, i32
  }
  func.func @transform_1(%arg0: i32) -> (i32, i32) {
    %c0_i32 = arith.constant 0 : i32
    %c0_i32_0 = arith.constant 0 : i32
    %c0_i32_1 = arith.constant 0 : i32
    return %c0_i32, %c0_i32_0 : i32, i32
  }
  func.func @transform_2(%arg0: i32) -> (i32, i32) {
    %c0_i32 = arith.constant 0 : i32
    %c0_i32_0 = arith.constant 0 : i32
    %c0_i32_1 = arith.constant 0 : i32
    return %c0_i32, %c0_i32_0 : i32, i32
  }
  func.func @transform_3(%arg0: i32) -> (i32, i32) {
    %c0_i32 = arith.constant 0 : i32
    %c0_i32_0 = arith.constant 0 : i32
    %c0_i32_1 = arith.constant 0 : i32
    return %c0_i32, %c0_i32_0 : i32, i32
  }
  func.func @transform_4(%arg0: i32) -> (i32, i32) {
    %c0_i32 = arith.constant 0 : i32
    %c0_i32_0 = arith.constant 0 : i32
    %c0_i32_1 = arith.constant 0 : i32
    return %c0_i32, %c0_i32_0 : i32, i32
  }
  func.func @transform_5(%arg0: i32) -> (i32, i32, i32) {
    %c0_i32 = arith.constant 0 : i32
    %c0_i32_0 = arith.constant 0 : i32
    %c0_i32_1 = arith.constant 0 : i32
    return %arg0, %c0_i32, %c0_i32_0 : i32, i32, i32
  }
  func.func @transform_6(%arg0: i32) -> (i32, i32, i32) {
    %c0_i32 = arith.constant 0 : i32
    %c0_i32_0 = arith.constant 0 : i32
    %c0_i32_1 = arith.constant 0 : i32
    return %arg0, %c0_i32, %c0_i32_0 : i32, i32, i32
  }
}

module attributes {stable_mosaic.version = 11 : i64} {
  func.func @_logits_argmax_kernel(%arg0: i32, %arg1: memref<2x32xbf16, #tpu.memory_space<vmem>>, %arg2: memref<1x32xf32, #tpu.memory_space<vmem>>, %arg3: memref<1x32xf32, #tpu.memory_space<vmem>>, %arg4: memref<32x128xbf16, #tpu.memory_space<vmem>>, %arg5: memref<2x1xi32, #tpu.memory_space<vmem>>, %arg6: memref<2x32xbf16, #tpu.memory_space<vmem>>, %arg7: memref<2x1xf32, #tpu.memory_space<vmem>>, %arg8: memref<2x1xi32, #tpu.memory_space<vmem>>) attributes {dimension_semantics = [#tpu.dimension_semantics<arbitrary>], iteration_bounds = array<i64: 1>, scalar_prefetch = 0 : i64, scratch_operands = 3 : i64, tpu.core_type = #tpu.core_type<tc>, window_params = [{pipeline_mode = #tpu.pipeline_mode<synchronous>, transform_indices = @transform_0, window_bounds = array<i64: 2, 32>}, {pipeline_mode = #tpu.pipeline_mode<synchronous>, transform_indices = @transform_1, window_bounds = array<i64: 1, 32>}, {pipeline_mode = #tpu.pipeline_mode<synchronous>, transform_indices = @transform_2, window_bounds = array<i64: 1, 32>}, {transform_indices = @transform_3, window_bounds = array<i64: 32, 128>}, {pipeline_mode = #tpu.pipeline_mode<synchronous>, transform_indices = @transform_4, window_bounds = array<i64: 2, 1>}]} {
    %c0_i32 = arith.constant 0 : i32
    %0 = arith.cmpi eq, %arg0, %c0_i32 : i32
    %1 = arith.extui %0 : i1 to i32
    %c0_i32_0 = arith.constant 0 : i32
    %2 = arith.cmpi ne, %1, %c0_i32_0 : i32
    scf.if %2 {
      %c0_19 = arith.constant 0 : index
      %c0_20 = arith.constant 0 : index
      %33 = vector.load %arg1[%c0_19, %c0_20] : memref<2x32xbf16, #tpu.memory_space<vmem>>, vector<2x32xbf16>
      %34 = arith.extf %33 : vector<2x32xbf16> to vector<2x32xf32>
      %c0_21 = arith.constant 0 : index
      %c0_22 = arith.constant 0 : index
      %35 = vector.load %arg2[%c0_21, %c0_22] : memref<1x32xf32, #tpu.memory_space<vmem>>, vector<1x32xf32>
      %c0_23 = arith.constant 0 : index
      %c0_24 = arith.constant 0 : index
      %36 = vector.load %arg3[%c0_23, %c0_24] : memref<1x32xf32, #tpu.memory_space<vmem>>, vector<1x32xf32>
      %cst_25 = arith.constant dense<0.000000e+00> : vector<2xf32>
      %37 = vector.multi_reduction <add>, %34, %cst_25 [1] : vector<2x32xf32> to vector<2xf32>
      %38 = vector.shape_cast %37 : vector<2xf32> to vector<2x1xf32>
      %cst_26 = arith.constant 3.200000e+01 : f32
      %39 = vector.broadcast %cst_26 : f32 to vector<2x1xf32>
      %40 = arith.divf %38, %39 : vector<2x1xf32>
      %41 = vector.broadcast %40 : vector<2x1xf32> to vector<2x32xf32>
      %42 = arith.subf %34, %41 : vector<2x32xf32>
      %43 = arith.mulf %42, %42 : vector<2x32xf32>
      %cst_27 = arith.constant dense<0.000000e+00> : vector<2xf32>
      %44 = vector.multi_reduction <add>, %43, %cst_27 [1] : vector<2x32xf32> to vector<2xf32>
      %45 = vector.shape_cast %44 : vector<2xf32> to vector<2x1xf32>
      %cst_28 = arith.constant 3.200000e+01 : f32
      %46 = vector.broadcast %cst_28 : f32 to vector<2x1xf32>
      %47 = arith.divf %45, %46 : vector<2x1xf32>
      %cst_29 = arith.constant 9.99999974E-6 : f32
      %48 = vector.broadcast %cst_29 : f32 to vector<2x1xf32>
      %49 = arith.addf %47, %48 : vector<2x1xf32>
      %50 = math.rsqrt %49 : vector<2x1xf32>
      %51 = vector.broadcast %50 : vector<2x1xf32> to vector<2x32xf32>
      %52 = arith.mulf %42, %51 : vector<2x32xf32>
      %53 = vector.broadcast %35 : vector<1x32xf32> to vector<2x32xf32>
      %54 = arith.mulf %52, %53 : vector<2x32xf32>
      %55 = vector.broadcast %36 : vector<1x32xf32> to vector<2x32xf32>
      %56 = arith.addf %54, %55 : vector<2x32xf32>
      %57 = arith.truncf %56 : vector<2x32xf32> to vector<2x32xbf16>
      %c0_30 = arith.constant 0 : index
      %c0_31 = arith.constant 0 : index
      %58 = vector.load %arg6[%c0_30, %c0_31] : memref<2x32xbf16, #tpu.memory_space<vmem>>, vector<2x32xbf16>
      tpu.vector_store %arg6[%c0_30, %c0_31], %57 {strides = array<i32>} : memref<2x32xbf16, #tpu.memory_space<vmem>>, vector<2x32xbf16>,
      %cst_32 = arith.constant 0xFF800000 : f32
      %59 = vector.broadcast %cst_32 : f32 to vector<2x1xf32>
      %c0_33 = arith.constant 0 : index
      %c0_34 = arith.constant 0 : index
      %60 = vector.load %arg7[%c0_33, %c0_34] : memref<2x1xf32, #tpu.memory_space<vmem>>, vector<2x1xf32>
      tpu.vector_store %arg7[%c0_33, %c0_34], %59 {strides = array<i32>} : memref<2x1xf32, #tpu.memory_space<vmem>>, vector<2x1xf32>,
      %c0_i32_35 = arith.constant 0 : i32
      %61 = vector.broadcast %c0_i32_35 : i32 to vector<2x1xi32>
      %c0_36 = arith.constant 0 : index
      %c0_37 = arith.constant 0 : index
      %62 = vector.load %arg8[%c0_36, %c0_37] : memref<2x1xi32, #tpu.memory_space<vmem>>, vector<2x1xi32>
      tpu.vector_store %arg8[%c0_36, %c0_37], %61 {strides = array<i32>} : memref<2x1xi32, #tpu.memory_space<vmem>>, vector<2x1xi32>,
    } else {
    }
    %c0 = arith.constant 0 : index
    %c0_1 = arith.constant 0 : index
    %3 = vector.load %arg6[%c0, %c0_1] : memref<2x32xbf16, #tpu.memory_space<vmem>>, vector<2x32xbf16>
    %c0_2 = arith.constant 0 : index
    %c0_3 = arith.constant 0 : index
    %4 = vector.load %arg4[%c0_2, %c0_3] : memref<32x128xbf16, #tpu.memory_space<vmem>>, vector<32x128xbf16>
    %cst = arith.constant dense<0.000000e+00> : vector<2x128xf32>
    %5 = tpu.matmul %3, %4, %cst {dimension_numbers = #tpu.dot_dimension_numbers<[1], [0], [0], [1], [0, 0, 1, 1], [], []>} : vector<2x32xbf16>, vector<32x128xbf16>, vector<2x128xf32> -> vector<2x128xf32>
    %6 = tpu.iota {dimensions = array<i32: 1>} : vector<2x128xi32>
    %c128_i32 = arith.constant 128 : i32
    %7 = arith.muli %arg0, %c128_i32 : i32
    %8 = vector.broadcast %7 : i32 to vector<2x128xi32>
    %9 = arith.addi %6, %8 : vector<2x128xi32>
    %c16_i32 = arith.constant 16 : i32
    %10 = vector.broadcast %c16_i32 : i32 to vector<2x128xi32>
    %11 = arith.cmpi slt, %9, %10 : vector<2x128xi32>
    %cst_4 = arith.constant 0xFF800000 : f32
    %12 = vector.broadcast %cst_4 : f32 to vector<2x128xf32>
    %13 = arith.select %11, %5, %12 : vector<2x128xi1>, vector<2x128xf32>
    %cst_5 = arith.constant dense<0xFF800000> : vector<2xf32>
    %14 = vector.multi_reduction <maximumf>, %13, %cst_5 [1] : vector<2x128xf32> to vector<2xf32>
    %15 = vector.shape_cast %14 : vector<2xf32> to vector<2x1xf32>
    %16 = vector.broadcast %15 : vector<2x1xf32> to vector<2x128xf32>
    %17 = arith.cmpf oeq, %13, %16 : vector<2x128xf32>
    %c2147483647_i32 = arith.constant 2147483647 : i32
    %18 = vector.broadcast %c2147483647_i32 : i32 to vector<2x128xi32>
    %19 = arith.select %17, %9, %18 : vector<2x128xi1>, vector<2x128xi32>
    %cst_6 = arith.constant dense<2147483647> : vector<2xi32>
    %20 = vector.multi_reduction <minsi>, %19, %cst_6 [1] : vector<2x128xi32> to vector<2xi32>
    %21 = vector.shape_cast %20 : vector<2xi32> to vector<2x1xi32>
    %c0_7 = arith.constant 0 : index
    %c0_8 = arith.constant 0 : index
    %22 = vector.load %arg7[%c0_7, %c0_8] : memref<2x1xf32, #tpu.memory_space<vmem>>, vector<2x1xf32>
    %23 = arith.cmpf ogt, %15, %22 : vector<2x1xf32>
    %c0_9 = arith.constant 0 : index
    %c0_10 = arith.constant 0 : index
    %24 = vector.load %arg8[%c0_9, %c0_10] : memref<2x1xi32, #tpu.memory_space<vmem>>, vector<2x1xi32>
    %25 = arith.select %23, %21, %24 : vector<2x1xi1>, vector<2x1xi32>
    %c0_11 = arith.constant 0 : index
    %c0_12 = arith.constant 0 : index
    %26 = vector.load %arg8[%c0_11, %c0_12] : memref<2x1xi32, #tpu.memory_space<vmem>>, vector<2x1xi32>
    tpu.vector_store %arg8[%c0_11, %c0_12], %25 {strides = array<i32>} : memref<2x1xi32, #tpu.memory_space<vmem>>, vector<2x1xi32>,
    %c0_13 = arith.constant 0 : index
    %c0_14 = arith.constant 0 : index
    %27 = vector.load %arg7[%c0_13, %c0_14] : memref<2x1xf32, #tpu.memory_space<vmem>>, vector<2x1xf32>
    %28 = arith.select %23, %15, %27 : vector<2x1xi1>, vector<2x1xf32>
    %c0_15 = arith.constant 0 : index
    %c0_16 = arith.constant 0 : index
    %29 = vector.load %arg7[%c0_15, %c0_16] : memref<2x1xf32, #tpu.memory_space<vmem>>, vector<2x1xf32>
    tpu.vector_store %arg7[%c0_15, %c0_16], %28 {strides = array<i32>} : memref<2x1xf32, #tpu.memory_space<vmem>>, vector<2x1xf32>,
    %c0_i32_17 = arith.constant 0 : i32
    %30 = arith.cmpi eq, %arg0, %c0_i32_17 : i32
    %31 = arith.extui %30 : i1 to i32
    %c0_i32_18 = arith.constant 0 : i32
    %32 = arith.cmpi ne, %31, %c0_i32_18 : i32
    scf.if %32 {
      %c0_19 = arith.constant 0 : index
      %c0_20 = arith.constant 0 : index
      %33 = vector.load %arg8[%c0_19, %c0_20] : memref<2x1xi32, #tpu.memory_space<vmem>>, vector<2x1xi32>
      %c0_21 = arith.constant 0 : index
      %c0_22 = arith.constant 0 : index
      %34 = vector.load %arg5[%c0_21, %c0_22] : memref<2x1xi32, #tpu.memory_space<vmem>>, vector<2x1xi32>
      tpu.vector_store %arg5[%c0_21, %c0_22], %33 {strides = array<i32>} : memref<2x1xi32, #tpu.memory_space<vmem>>, vector<2x1xi32>,
    } else {
    }
    return
  }
  func.func @transform_0(%arg0: i32) -> (i32, i32) {
    %c0_i32 = arith.constant 0 : i32
    %c0_i32_0 = arith.constant 0 : i32
    %c0_i32_1 = arith.constant 0 : i32
    return %c0_i32, %c0_i32_0 : i32, i32
  }
  func.func @transform_1(%arg0: i32) -> (i32, i32) {
    %c0_i32 = arith.constant 0 : i32
    %c0_i32_0 = arith.constant 0 : i32
    %c0_i32_1 = arith.constant 0 : i32
    return %c0_i32, %c0_i32_0 : i32, i32
  }
  func.func @transform_2(%arg0: i32) -> (i32, i32) {
    %c0_i32 = arith.constant 0 : i32
    %c0_i32_0 = arith.constant 0 : i32
    %c0_i32_1 = arith.constant 0 : i32
    return %c0_i32, %c0_i32_0 : i32, i32
  }
  func.func @transform_3(%arg0: i32) -> (i32, i32) {
    %c0_i32 = arith.constant 0 : i32
    %c0_i32_0 = arith.constant 0 : i32
    return %c0_i32, %arg0 : i32, i32
  }
  func.func @transform_4(%arg0: i32) -> (i32, i32) {
    %c0_i32 = arith.constant 0 : i32
    %c0_i32_0 = arith.constant 0 : i32
    %c0_i32_1 = arith.constant 0 : i32
    return %c0_i32, %c0_i32_0 : i32, i32
  }
}

module attributes {stable_mosaic.version = 11 : i64} {
  func.func @_dec_layer_step_kernel(%arg0: i32, %arg1: memref<1xi32, #tpu.memory_space<smem>>, %arg2: memref<1x1x32xbf16, #tpu.memory_space<vmem>>, %arg3: memref<1x16x32xbf16, #tpu.memory_space<vmem>>, %arg4: memref<1x16x32xbf16, #tpu.memory_space<vmem>>, %arg5: memref<1x16x32xbf16, #tpu.memory_space<vmem>>, %arg6: memref<1x16x32xbf16, #tpu.memory_space<vmem>>, %arg7: memref<32x96xbf16, #tpu.memory_space<vmem>>, %arg8: memref<1x96xf32, #tpu.memory_space<vmem>>, %arg9: memref<32x32xbf16, #tpu.memory_space<vmem>>, %arg10: memref<1x32xf32, #tpu.memory_space<vmem>>, %arg11: memref<1x32xf32, #tpu.memory_space<vmem>>, %arg12: memref<1x32xf32, #tpu.memory_space<vmem>>, %arg13: memref<32x32xbf16, #tpu.memory_space<vmem>>, %arg14: memref<1x32xf32, #tpu.memory_space<vmem>>, %arg15: memref<32x32xbf16, #tpu.memory_space<vmem>>, %arg16: memref<1x32xf32, #tpu.memory_space<vmem>>, %arg17: memref<1x32xf32, #tpu.memory_space<vmem>>, %arg18: memref<1x32xf32, #tpu.memory_space<vmem>>, %arg19: memref<32x128xbf16, #tpu.memory_space<vmem>>, %arg20: memref<1x128xf32, #tpu.memory_space<vmem>>, %arg21: memref<128x32xbf16, #tpu.memory_space<vmem>>, %arg22: memref<1x32xf32, #tpu.memory_space<vmem>>, %arg23: memref<1x32xf32, #tpu.memory_space<vmem>>, %arg24: memref<1x32xf32, #tpu.memory_space<vmem>>, %arg25: memref<1x1x32xbf16, #tpu.memory_space<vmem>>, %arg26: memref<1x16x32xbf16, #tpu.memory_space<vmem>>, %arg27: memref<1x16x32xbf16, #tpu.memory_space<vmem>>) attributes {dimension_semantics = [#tpu.dimension_semantics<parallel>], iteration_bounds = array<i64: 2>, scalar_prefetch = 1 : i64, scratch_operands = 0 : i64, tpu.core_type = #tpu.core_type<tc>, window_params = [{transform_indices = @transform_0, window_bounds = array<i64: 1, 1, 32>}, {transform_indices = @transform_1, window_bounds = array<i64: 1, 16, 32>}, {transform_indices = @transform_2, window_bounds = array<i64: 1, 16, 32>}, {transform_indices = @transform_3, window_bounds = array<i64: 1, 16, 32>}, {transform_indices = @transform_4, window_bounds = array<i64: 1, 16, 32>}, {pipeline_mode = #tpu.pipeline_mode<synchronous>, transform_indices = @transform_5, window_bounds = array<i64: 32, 96>}, {pipeline_mode = #tpu.pipeline_mode<synchronous>, transform_indices = @transform_6, window_bounds = array<i64: 1, 96>}, {pipeline_mode = #tpu.pipeline_mode<synchronous>, transform_indices = @transform_7, window_bounds = array<i64: 32, 32>}, {pipeline_mode = #tpu.pipeline_mode<synchronous>, transform_indices = @transform_8, window_bounds = array<i64: 1, 32>}, {pipeline_mode = #tpu.pipeline_mode<synchronous>, transform_indices = @transform_9, window_bounds = array<i64: 1, 32>}, {pipeline_mode = #tpu.pipeline_mode<synchronous>, transform_indices = @transform_10, window_bounds = array<i64: 1, 32>}, {pipeline_mode = #tpu.pipeline_mode<synchronous>, transform_indices = @transform_11, window_bounds = array<i64: 32, 32>}, {pipeline_mode = #tpu.pipeline_mode<synchronous>, transform_indices = @transform_12, window_bounds = array<i64: 1, 32>}, {pipeline_mode = #tpu.pipeline_mode<synchronous>, transform_indices = @transform_13, window_bounds = array<i64: 32, 32>}, {pipeline_mode = #tpu.pipeline_mode<synchronous>, transform_indices = @transform_14, window_bounds = array<i64: 1, 32>}, {pipeline_mode = #tpu.pipeline_mode<synchronous>, transform_indices = @transform_15, window_bounds = array<i64: 1, 32>}, {pipeline_mode = #tpu.pipeline_mode<synchronous>, transform_indices = @transform_16, window_bounds = array<i64: 1, 32>}, {pipeline_mode = #tpu.pipeline_mode<synchronous>, transform_indices = @transform_17, window_bounds = array<i64: 32, 128>}, {pipeline_mode = #tpu.pipeline_mode<synchronous>, transform_indices = @transform_18, window_bounds = array<i64: 1, 128>}, {pipeline_mode = #tpu.pipeline_mode<synchronous>, transform_indices = @transform_19, window_bounds = array<i64: 128, 32>}, {pipeline_mode = #tpu.pipeline_mode<synchronous>, transform_indices = @transform_20, window_bounds = array<i64: 1, 32>}, {pipeline_mode = #tpu.pipeline_mode<synchronous>, transform_indices = @transform_21, window_bounds = array<i64: 1, 32>}, {pipeline_mode = #tpu.pipeline_mode<synchronous>, transform_indices = @transform_22, window_bounds = array<i64: 1, 32>}, {transform_indices = @transform_23, window_bounds = array<i64: 1, 1, 32>}, {transform_indices = @transform_24, window_bounds = array<i64: 1, 16, 32>}, {transform_indices = @transform_25, window_bounds = array<i64: 1, 16, 32>}]} {
    %c0 = arith.constant 0 : index
    %0 = memref.load %arg1[%c0] : memref<1xi32, #tpu.memory_space<smem>>
    %c0_0 = arith.constant 0 : index
    %c0_1 = arith.constant 0 : index
    %c0_2 = arith.constant 0 : index
    %1 = vector.load %arg2[%c0_0, %c0_1, %c0_2] : memref<1x1x32xbf16, #tpu.memory_space<vmem>>, vector<1x1x32xbf16>
    %2 = vector.shape_cast %1 : vector<1x1x32xbf16> to vector<1x32xbf16>
    %3 = arith.extf %2 : vector<1x32xbf16> to vector<1x32xf32>
    %c0_3 = arith.constant 0 : index
    %c0_4 = arith.constant 0 : index
    %4 = vector.load %arg7[%c0_3, %c0_4] : memref<32x96xbf16, #tpu.memory_space<vmem>>, vector<32x96xbf16>
    %cst = arith.constant dense<0.000000e+00> : vector<1x96xf32>
    %5 = tpu.matmul %2, %4, %cst {dimension_numbers = #tpu.dot_dimension_numbers<[1], [0], [0], [1], [0, 0, 1, 1], [], []>} : vector<1x32xbf16>, vector<32x96xbf16>, vector<1x96xf32> -> vector<1x96xf32>
    %c0_5 = arith.constant 0 : index
    %c0_6 = arith.constant 0 : index
    %6 = vector.load %arg8[%c0_5, %c0_6] : memref<1x96xf32, #tpu.memory_space<vmem>>, vector<1x96xf32>
    %7 = arith.addf %5, %6 : vector<1x96xf32>
    %8 = vector.extract_strided_slice %7 {offsets = [0, 0], sizes = [1, 32], strides = [1, 1]} : vector<1x96xf32> to vector<1x32xf32>
    %9 = vector.extract_strided_slice %7 {offsets = [0, 32], sizes = [1, 32], strides = [1, 1]} : vector<1x96xf32> to vector<1x32xf32>
    %10 = arith.truncf %9 : vector<1x32xf32> to vector<1x32xbf16>
    %11 = vector.extract_strided_slice %7 {offsets = [0, 64], sizes = [1, 32], strides = [1, 1]} : vector<1x96xf32> to vector<1x32xf32>
    %12 = arith.truncf %11 : vector<1x32xf32> to vector<1x32xbf16>
    %13 = tpu.iota {dimensions = array<i32: 0>} : vector<16x32xi32>
    %14 = vector.broadcast %0 : i32 to vector<16x32xi32>
    %15 = arith.cmpi eq, %13, %14 : vector<16x32xi32>
    %c0_7 = arith.constant 0 : index
    %c0_8 = arith.constant 0 : index
    %c0_9 = arith.constant 0 : index
    %16 = vector.load %arg3[%c0_7, %c0_8, %c0_9] : memref<1x16x32xbf16, #tpu.memory_space<vmem>>, vector<1x16x32xbf16>
    %17 = vector.shape_cast %16 : vector<1x16x32xbf16> to vector<16x32xbf16>
    %18 = vector.shape_cast %10 : vector<1x32xbf16> to vector<1x32xbf16>
    %19 = vector.broadcast %18 : vector<1x32xbf16> to vector<16x32xbf16>
    %20 = arith.select %15, %19, %17 : vector<16x32xi1>, vector<16x32xbf16>
    %21 = vector.broadcast %0 : i32 to vector<16x32xi32>
    %22 = arith.cmpi eq, %13, %21 : vector<16x32xi32>
    %c0_10 = arith.constant 0 : index
    %c0_11 = arith.constant 0 : index
    %c0_12 = arith.constant 0 : index
    %23 = vector.load %arg4[%c0_10, %c0_11, %c0_12] : memref<1x16x32xbf16, #tpu.memory_space<vmem>>, vector<1x16x32xbf16>
    %24 = vector.shape_cast %23 : vector<1x16x32xbf16> to vector<16x32xbf16>
    %25 = vector.shape_cast %12 : vector<1x32xbf16> to vector<1x32xbf16>
    %26 = vector.broadcast %25 : vector<1x32xbf16> to vector<16x32xbf16>
    %27 = arith.select %22, %26, %24 : vector<16x32xi1>, vector<16x32xbf16>
    %c0_13 = arith.constant 0 : index
    %c0_14 = arith.constant 0 : index
    %c0_15 = arith.constant 0 : index
    %28 = vector.load %arg26[%c0_13, %c0_14, %c0_15] : memref<1x16x32xbf16, #tpu.memory_space<vmem>>, vector<1x16x32xbf16>
    %29 = vector.shape_cast %28 : vector<1x16x32xbf16> to vector<16x32xbf16>
    %30 = vector.shape_cast %20 : vector<16x32xbf16> to vector<1x16x32xbf16>
    tpu.vector_store %arg26[%c0_13, %c0_14, %c0_15], %30 {strides = array<i32>} : memref<1x16x32xbf16, #tpu.memory_space<vmem>>, vector<1x16x32xbf16>,
    %c0_16 = arith.constant 0 : index
    %c0_17 = arith.constant 0 : index
    %c0_18 = arith.constant 0 : index
    %31 = vector.load %arg27[%c0_16, %c0_17, %c0_18] : memref<1x16x32xbf16, #tpu.memory_space<vmem>>, vector<1x16x32xbf16>
    %32 = vector.shape_cast %31 : vector<1x16x32xbf16> to vector<16x32xbf16>
    %33 = vector.shape_cast %27 : vector<16x32xbf16> to vector<1x16x32xbf16>
    tpu.vector_store %arg27[%c0_16, %c0_17, %c0_18], %33 {strides = array<i32>} : memref<1x16x32xbf16, #tpu.memory_space<vmem>>, vector<1x16x32xbf16>,
    %34 = arith.truncf %8 : vector<1x32xf32> to vector<1x32xbf16>
    %cst_19 = arith.constant dense<0.000000e+00> : vector<1x16xf32>
    %35 = tpu.matmul %34, %20, %cst_19 {dimension_numbers = #tpu.dot_dimension_numbers<[1], [1], [0], [0], [0, 0, 1, 0], [], []>} : vector<1x32xbf16>, vector<16x32xbf16>, vector<1x16xf32> -> vector<1x16xf32>
    %cst_20 = arith.constant 0.176776692 : f32
    %36 = vector.broadcast %cst_20 : f32 to vector<1x16xf32>
    %37 = arith.mulf %35, %36 : vector<1x16xf32>
    %38 = tpu.iota {dimensions = array<i32: 1>} : vector<1x16xi32>
    %39 = vector.broadcast %0 : i32 to vector<1x16xi32>
    %40 = arith.cmpi sle, %38, %39 : vector<1x16xi32>
    %cst_21 = arith.constant -1.000000e+30 : f32
    %41 = vector.broadcast %cst_21 : f32 to vector<1x16xf32>
    %42 = arith.select %40, %37, %41 : vector<1x16xi1>, vector<1x16xf32>
    %cst_22 = arith.constant dense<0xFF800000> : vector<1xf32>
    %43 = vector.multi_reduction <maximumf>, %42, %cst_22 [1] : vector<1x16xf32> to vector<1xf32>
    %44 = vector.shape_cast %43 : vector<1xf32> to vector<1x1xf32>
    %45 = vector.broadcast %44 : vector<1x1xf32> to vector<1x16xf32>
    %46 = arith.subf %42, %45 : vector<1x16xf32>
    %47 = math.exp %46 : vector<1x16xf32>
    %cst_23 = arith.constant dense<0.000000e+00> : vector<1xf32>
    %48 = vector.multi_reduction <add>, %47, %cst_23 [1] : vector<1x16xf32> to vector<1xf32>
    %49 = vector.shape_cast %48 : vector<1xf32> to vector<1x1xf32>
    %50 = vector.broadcast %49 : vector<1x1xf32> to vector<1x16xf32>
    %51 = arith.divf %47, %50 : vector<1x16xf32>
    %52 = arith.truncf %51 : vector<1x16xf32> to vector<1x16xbf16>
    %cst_24 = arith.constant dense<0.000000e+00> : vector<1x32xf32>
    %53 = tpu.matmul %52, %27, %cst_24 {dimension_numbers = #tpu.dot_dimension_numbers<[1], [0], [0], [1], [0, 0, 1, 1], [], []>} : vector<1x16xbf16>, vector<16x32xbf16>, vector<1x32xf32> -> vector<1x32xf32>
    %54 = arith.truncf %53 : vector<1x32xf32> to vector<1x32xbf16>
    %c0_25 = arith.constant 0 : index
    %c0_26 = arith.constant 0 : index
    %55 = vector.load %arg9[%c0_25, %c0_26] : memref<32x32xbf16, #tpu.memory_space<vmem>>, vector<32x32xbf16>
    %cst_27 = arith.constant dense<0.000000e+00> : vector<1x32xf32>
    %56 = tpu.matmul %54, %55, %cst_27 {dimension_numbers = #tpu.dot_dimension_numbers<[1], [0], [0], [1], [0, 0, 1, 1], [], []>} : vector<1x32xbf16>, vector<32x32xbf16>, vector<1x32xf32> -> vector<1x32xf32>
    %c0_28 = arith.constant 0 : index
    %c0_29 = arith.constant 0 : index
    %57 = vector.load %arg10[%c0_28, %c0_29] : memref<1x32xf32, #tpu.memory_space<vmem>>, vector<1x32xf32>
    %58 = arith.addf %56, %57 : vector<1x32xf32>
    %59 = arith.addf %3, %58 : vector<1x32xf32>
    %c0_30 = arith.constant 0 : index
    %c0_31 = arith.constant 0 : index
    %60 = vector.load %arg11[%c0_30, %c0_31] : memref<1x32xf32, #tpu.memory_space<vmem>>, vector<1x32xf32>
    %c0_32 = arith.constant 0 : index
    %c0_33 = arith.constant 0 : index
    %61 = vector.load %arg12[%c0_32, %c0_33] : memref<1x32xf32, #tpu.memory_space<vmem>>, vector<1x32xf32>
    %cst_34 = arith.constant dense<0.000000e+00> : vector<1xf32>
    %62 = vector.multi_reduction <add>, %59, %cst_34 [1] : vector<1x32xf32> to vector<1xf32>
    %63 = vector.shape_cast %62 : vector<1xf32> to vector<1x1xf32>
    %cst_35 = arith.constant 3.200000e+01 : f32
    %64 = vector.broadcast %cst_35 : f32 to vector<1x1xf32>
    %65 = arith.divf %63, %64 : vector<1x1xf32>
    %66 = vector.broadcast %65 : vector<1x1xf32> to vector<1x32xf32>
    %67 = arith.subf %59, %66 : vector<1x32xf32>
    %68 = arith.mulf %67, %67 : vector<1x32xf32>
    %cst_36 = arith.constant dense<0.000000e+00> : vector<1xf32>
    %69 = vector.multi_reduction <add>, %68, %cst_36 [1] : vector<1x32xf32> to vector<1xf32>
    %70 = vector.shape_cast %69 : vector<1xf32> to vector<1x1xf32>
    %cst_37 = arith.constant 3.200000e+01 : f32
    %71 = vector.broadcast %cst_37 : f32 to vector<1x1xf32>
    %72 = arith.divf %70, %71 : vector<1x1xf32>
    %cst_38 = arith.constant 9.99999974E-6 : f32
    %73 = vector.broadcast %cst_38 : f32 to vector<1x1xf32>
    %74 = arith.addf %72, %73 : vector<1x1xf32>
    %75 = math.rsqrt %74 : vector<1x1xf32>
    %76 = vector.broadcast %75 : vector<1x1xf32> to vector<1x32xf32>
    %77 = arith.mulf %67, %76 : vector<1x32xf32>
    %78 = arith.mulf %77, %60 : vector<1x32xf32>
    %79 = arith.addf %78, %61 : vector<1x32xf32>
    %80 = arith.truncf %79 : vector<1x32xf32> to vector<1x32xbf16>
    %c0_39 = arith.constant 0 : index
    %c0_40 = arith.constant 0 : index
    %81 = vector.load %arg13[%c0_39, %c0_40] : memref<32x32xbf16, #tpu.memory_space<vmem>>, vector<32x32xbf16>
    %cst_41 = arith.constant dense<0.000000e+00> : vector<1x32xf32>
    %82 = tpu.matmul %80, %81, %cst_41 {dimension_numbers = #tpu.dot_dimension_numbers<[1], [0], [0], [1], [0, 0, 1, 1], [], []>} : vector<1x32xbf16>, vector<32x32xbf16>, vector<1x32xf32> -> vector<1x32xf32>
    %c0_42 = arith.constant 0 : index
    %c0_43 = arith.constant 0 : index
    %83 = vector.load %arg14[%c0_42, %c0_43] : memref<1x32xf32, #tpu.memory_space<vmem>>, vector<1x32xf32>
    %84 = arith.addf %82, %83 : vector<1x32xf32>
    %c0_44 = arith.constant 0 : index
    %c0_45 = arith.constant 0 : index
    %c0_46 = arith.constant 0 : index
    %85 = vector.load %arg5[%c0_44, %c0_45, %c0_46] : memref<1x16x32xbf16, #tpu.memory_space<vmem>>, vector<1x16x32xbf16>
    %86 = vector.shape_cast %85 : vector<1x16x32xbf16> to vector<16x32xbf16>
    %c0_47 = arith.constant 0 : index
    %c0_48 = arith.constant 0 : index
    %c0_49 = arith.constant 0 : index
    %87 = vector.load %arg6[%c0_47, %c0_48, %c0_49] : memref<1x16x32xbf16, #tpu.memory_space<vmem>>, vector<1x16x32xbf16>
    %88 = vector.shape_cast %87 : vector<1x16x32xbf16> to vector<16x32xbf16>
    %89 = arith.truncf %84 : vector<1x32xf32> to vector<1x32xbf16>
    %cst_50 = arith.constant dense<0.000000e+00> : vector<1x16xf32>
    %90 = tpu.matmul %89, %86, %cst_50 {dimension_numbers = #tpu.dot_dimension_numbers<[1], [1], [0], [0], [0, 0, 1, 0], [], []>} : vector<1x32xbf16>, vector<16x32xbf16>, vector<1x16xf32> -> vector<1x16xf32>
    %cst_51 = arith.constant 0.176776692 : f32
    %91 = vector.broadcast %cst_51 : f32 to vector<1x16xf32>
    %92 = arith.mulf %90, %91 : vector<1x16xf32>
    %cst_52 = arith.constant dense<0xFF800000> : vector<1xf32>
    %93 = vector.multi_reduction <maximumf>, %92, %cst_52 [1] : vector<1x16xf32> to vector<1xf32>
    %94 = vector.shape_cast %93 : vector<1xf32> to vector<1x1xf32>
    %95 = vector.broadcast %94 : vector<1x1xf32> to vector<1x16xf32>
    %96 = arith.subf %92, %95 : vector<1x16xf32>
    %97 = math.exp %96 : vector<1x16xf32>
    %cst_53 = arith.constant dense<0.000000e+00> : vector<1xf32>
    %98 = vector.multi_reduction <add>, %97, %cst_53 [1] : vector<1x16xf32> to vector<1xf32>
    %99 = vector.shape_cast %98 : vector<1xf32> to vector<1x1xf32>
    %100 = vector.broadcast %99 : vector<1x1xf32> to vector<1x16xf32>
    %101 = arith.divf %97, %100 : vector<1x16xf32>
    %102 = arith.truncf %101 : vector<1x16xf32> to vector<1x16xbf16>
    %cst_54 = arith.constant dense<0.000000e+00> : vector<1x32xf32>
    %103 = tpu.matmul %102, %88, %cst_54 {dimension_numbers = #tpu.dot_dimension_numbers<[1], [0], [0], [1], [0, 0, 1, 1], [], []>} : vector<1x16xbf16>, vector<16x32xbf16>, vector<1x32xf32> -> vector<1x32xf32>
    %104 = arith.truncf %103 : vector<1x32xf32> to vector<1x32xbf16>
    %c0_55 = arith.constant 0 : index
    %c0_56 = arith.constant 0 : index
    %105 = vector.load %arg15[%c0_55, %c0_56] : memref<32x32xbf16, #tpu.memory_space<vmem>>, vector<32x32xbf16>
    %cst_57 = arith.constant dense<0.000000e+00> : vector<1x32xf32>
    %106 = tpu.matmul %104, %105, %cst_57 {dimension_numbers = #tpu.dot_dimension_numbers<[1], [0], [0], [1], [0, 0, 1, 1], [], []>} : vector<1x32xbf16>, vector<32x32xbf16>, vector<1x32xf32> -> vector<1x32xf32>
    %c0_58 = arith.constant 0 : index
    %c0_59 = arith.constant 0 : index
    %107 = vector.load %arg16[%c0_58, %c0_59] : memref<1x32xf32, #tpu.memory_space<vmem>>, vector<1x32xf32>
    %108 = arith.addf %106, %107 : vector<1x32xf32>
    %109 = arith.addf %79, %108 : vector<1x32xf32>
    %c0_60 = arith.constant 0 : index
    %c0_61 = arith.constant 0 : index
    %110 = vector.load %arg17[%c0_60, %c0_61] : memref<1x32xf32, #tpu.memory_space<vmem>>, vector<1x32xf32>
    %c0_62 = arith.constant 0 : index
    %c0_63 = arith.constant 0 : index
    %111 = vector.load %arg18[%c0_62, %c0_63] : memref<1x32xf32, #tpu.memory_space<vmem>>, vector<1x32xf32>
    %cst_64 = arith.constant dense<0.000000e+00> : vector<1xf32>
    %112 = vector.multi_reduction <add>, %109, %cst_64 [1] : vector<1x32xf32> to vector<1xf32>
    %113 = vector.shape_cast %112 : vector<1xf32> to vector<1x1xf32>
    %cst_65 = arith.constant 3.200000e+01 : f32
    %114 = vector.broadcast %cst_65 : f32 to vector<1x1xf32>
    %115 = arith.divf %113, %114 : vector<1x1xf32>
    %116 = vector.broadcast %115 : vector<1x1xf32> to vector<1x32xf32>
    %117 = arith.subf %109, %116 : vector<1x32xf32>
    %118 = arith.mulf %117, %117 : vector<1x32xf32>
    %cst_66 = arith.constant dense<0.000000e+00> : vector<1xf32>
    %119 = vector.multi_reduction <add>, %118, %cst_66 [1] : vector<1x32xf32> to vector<1xf32>
    %120 = vector.shape_cast %119 : vector<1xf32> to vector<1x1xf32>
    %cst_67 = arith.constant 3.200000e+01 : f32
    %121 = vector.broadcast %cst_67 : f32 to vector<1x1xf32>
    %122 = arith.divf %120, %121 : vector<1x1xf32>
    %cst_68 = arith.constant 9.99999974E-6 : f32
    %123 = vector.broadcast %cst_68 : f32 to vector<1x1xf32>
    %124 = arith.addf %122, %123 : vector<1x1xf32>
    %125 = math.rsqrt %124 : vector<1x1xf32>
    %126 = vector.broadcast %125 : vector<1x1xf32> to vector<1x32xf32>
    %127 = arith.mulf %117, %126 : vector<1x32xf32>
    %128 = arith.mulf %127, %110 : vector<1x32xf32>
    %129 = arith.addf %128, %111 : vector<1x32xf32>
    %130 = arith.truncf %129 : vector<1x32xf32> to vector<1x32xbf16>
    %c0_69 = arith.constant 0 : index
    %c0_70 = arith.constant 0 : index
    %131 = vector.load %arg19[%c0_69, %c0_70] : memref<32x128xbf16, #tpu.memory_space<vmem>>, vector<32x128xbf16>
    %cst_71 = arith.constant dense<0.000000e+00> : vector<1x128xf32>
    %132 = tpu.matmul %130, %131, %cst_71 {dimension_numbers = #tpu.dot_dimension_numbers<[1], [0], [0], [1], [0, 0, 1, 1], [], []>} : vector<1x32xbf16>, vector<32x128xbf16>, vector<1x128xf32> -> vector<1x128xf32>
    %c0_72 = arith.constant 0 : index
    %c0_73 = arith.constant 0 : index
    %133 = vector.load %arg20[%c0_72, %c0_73] : memref<1x128xf32, #tpu.memory_space<vmem>>, vector<1x128xf32>
    %134 = arith.addf %132, %133 : vector<1x128xf32>
    %cst_74 = arith.constant 0.000000e+00 : f32
    %135 = vector.broadcast %cst_74 : f32 to vector<1x128xf32>
    %136 = arith.maximumf %134, %135 : vector<1x128xf32>
    %137 = arith.truncf %136 : vector<1x128xf32> to vector<1x128xbf16>
    %c0_75 = arith.constant 0 : index
    %c0_76 = arith.constant 0 : index
    %138 = vector.load %arg21[%c0_75, %c0_76] : memref<128x32xbf16, #tpu.memory_space<vmem>>, vector<128x32xbf16>
    %cst_77 = arith.constant dense<0.000000e+00> : vector<1x32xf32>
    %139 = tpu.matmul %137, %138, %cst_77 {dimension_numbers = #tpu.dot_dimension_numbers<[1], [0], [0], [1], [0, 0, 1, 1], [], []>} : vector<1x128xbf16>, vector<128x32xbf16>, vector<1x32xf32> -> vector<1x32xf32>
    %c0_78 = arith.constant 0 : index
    %c0_79 = arith.constant 0 : index
    %140 = vector.load %arg22[%c0_78, %c0_79] : memref<1x32xf32, #tpu.memory_space<vmem>>, vector<1x32xf32>
    %141 = arith.addf %139, %140 : vector<1x32xf32>
    %142 = arith.addf %129, %141 : vector<1x32xf32>
    %c0_80 = arith.constant 0 : index
    %c0_81 = arith.constant 0 : index
    %143 = vector.load %arg23[%c0_80, %c0_81] : memref<1x32xf32, #tpu.memory_space<vmem>>, vector<1x32xf32>
    %c0_82 = arith.constant 0 : index
    %c0_83 = arith.constant 0 : index
    %144 = vector.load %arg24[%c0_82, %c0_83] : memref<1x32xf32, #tpu.memory_space<vmem>>, vector<1x32xf32>
    %cst_84 = arith.constant dense<0.000000e+00> : vector<1xf32>
    %145 = vector.multi_reduction <add>, %142, %cst_84 [1] : vector<1x32xf32> to vector<1xf32>
    %146 = vector.shape_cast %145 : vector<1xf32> to vector<1x1xf32>
    %cst_85 = arith.constant 3.200000e+01 : f32
    %147 = vector.broadcast %cst_85 : f32 to vector<1x1xf32>
    %148 = arith.divf %146, %147 : vector<1x1xf32>
    %149 = vector.broadcast %148 : vector<1x1xf32> to vector<1x32xf32>
    %150 = arith.subf %142, %149 : vector<1x32xf32>
    %151 = arith.mulf %150, %150 : vector<1x32xf32>
    %cst_86 = arith.constant dense<0.000000e+00> : vector<1xf32>
    %152 = vector.multi_reduction <add>, %151, %cst_86 [1] : vector<1x32xf32> to vector<1xf32>
    %153 = vector.shape_cast %152 : vector<1xf32> to vector<1x1xf32>
    %cst_87 = arith.constant 3.200000e+01 : f32
    %154 = vector.broadcast %cst_87 : f32 to vector<1x1xf32>
    %155 = arith.divf %153, %154 : vector<1x1xf32>
    %cst_88 = arith.constant 9.99999974E-6 : f32
    %156 = vector.broadcast %cst_88 : f32 to vector<1x1xf32>
    %157 = arith.addf %155, %156 : vector<1x1xf32>
    %158 = math.rsqrt %157 : vector<1x1xf32>
    %159 = vector.broadcast %158 : vector<1x1xf32> to vector<1x32xf32>
    %160 = arith.mulf %150, %159 : vector<1x32xf32>
    %161 = arith.mulf %160, %143 : vector<1x32xf32>
    %162 = arith.addf %161, %144 : vector<1x32xf32>
    %163 = arith.truncf %162 : vector<1x32xf32> to vector<1x32xbf16>
    %c0_89 = arith.constant 0 : index
    %c0_90 = arith.constant 0 : index
    %c0_91 = arith.constant 0 : index
    %164 = vector.load %arg25[%c0_89, %c0_90, %c0_91] : memref<1x1x32xbf16, #tpu.memory_space<vmem>>, vector<1x1x32xbf16>
    %165 = vector.shape_cast %164 : vector<1x1x32xbf16> to vector<1x32xbf16>
    %166 = vector.shape_cast %163 : vector<1x32xbf16> to vector<1x1x32xbf16>
    tpu.vector_store %arg25[%c0_89, %c0_90, %c0_91], %166 {strides = array<i32>} : memref<1x1x32xbf16, #tpu.memory_space<vmem>>, vector<1x1x32xbf16>,
    return
  }
  func.func @transform_0(%arg0: i32, %arg1: memref<1xi32, #tpu.memory_space<smem>>) -> (i32, i32, i32) {
    %c0_i32 = arith.constant 0 : i32
    %c0_i32_0 = arith.constant 0 : i32
    %c0_i32_1 = arith.constant 0 : i32
    return %arg0, %c0_i32, %c0_i32_0 : i32, i32, i32
  }
  func.func @transform_1(%arg0: i32, %arg1: memref<1xi32, #tpu.memory_space<smem>>) -> (i32, i32, i32) {
    %c0_i32 = arith.constant 0 : i32
    %c0_i32_0 = arith.constant 0 : i32
    %c0_i32_1 = arith.constant 0 : i32
    return %arg0, %c0_i32, %c0_i32_0 : i32, i32, i32
  }
  func.func @transform_2(%arg0: i32, %arg1: memref<1xi32, #tpu.memory_space<smem>>) -> (i32, i32, i32) {
    %c0_i32 = arith.constant 0 : i32
    %c0_i32_0 = arith.constant 0 : i32
    %c0_i32_1 = arith.constant 0 : i32
    return %arg0, %c0_i32, %c0_i32_0 : i32, i32, i32
  }
  func.func @transform_3(%arg0: i32, %arg1: memref<1xi32, #tpu.memory_space<smem>>) -> (i32, i32, i32) {
    %c0_i32 = arith.constant 0 : i32
    %c0_i32_0 = arith.constant 0 : i32
    %c0_i32_1 = arith.constant 0 : i32
    return %arg0, %c0_i32, %c0_i32_0 : i32, i32, i32
  }
  func.func @transform_4(%arg0: i32, %arg1: memref<1xi32, #tpu.memory_space<smem>>) -> (i32, i32, i32) {
    %c0_i32 = arith.constant 0 : i32
    %c0_i32_0 = arith.constant 0 : i32
    %c0_i32_1 = arith.constant 0 : i32
    return %arg0, %c0_i32, %c0_i32_0 : i32, i32, i32
  }
  func.func @transform_5(%arg0: i32, %arg1: memref<1xi32, #tpu.memory_space<smem>>) -> (i32, i32) {
    %c0_i32 = arith.constant 0 : i32
    %c0_i32_0 = arith.constant 0 : i32
    %c0_i32_1 = arith.constant 0 : i32
    return %c0_i32, %c0_i32_0 : i32, i32
  }
  func.func @transform_6(%arg0: i32, %arg1: memref<1xi32, #tpu.memory_space<smem>>) -> (i32, i32) {
    %c0_i32 = arith.constant 0 : i32
    %c0_i32_0 = arith.constant 0 : i32
    %c0_i32_1 = arith.constant 0 : i32
    return %c0_i32, %c0_i32_0 : i32, i32
  }
  func.func @transform_7(%arg0: i32, %arg1: memref<1xi32, #tpu.memory_space<smem>>) -> (i32, i32) {
    %c0_i32 = arith.constant 0 : i32
    %c0_i32_0 = arith.constant 0 : i32
    %c0_i32_1 = arith.constant 0 : i32
    return %c0_i32, %c0_i32_0 : i32, i32
  }
  func.func @transform_8(%arg0: i32, %arg1: memref<1xi32, #tpu.memory_space<smem>>) -> (i32, i32) {
    %c0_i32 = arith.constant 0 : i32
    %c0_i32_0 = arith.constant 0 : i32
    %c0_i32_1 = arith.constant 0 : i32
    return %c0_i32, %c0_i32_0 : i32, i32
  }
  func.func @transform_9(%arg0: i32, %arg1: memref<1xi32, #tpu.memory_space<smem>>) -> (i32, i32) {
    %c0_i32 = arith.constant 0 : i32
    %c0_i32_0 = arith.constant 0 : i32
    %c0_i32_1 = arith.constant 0 : i32
    return %c0_i32, %c0_i32_0 : i32, i32
  }
  func.func @transform_10(%arg0: i32, %arg1: memref<1xi32, #tpu.memory_space<smem>>) -> (i32, i32) {
    %c0_i32 = arith.constant 0 : i32
    %c0_i32_0 = arith.constant 0 : i32
    %c0_i32_1 = arith.constant 0 : i32
    return %c0_i32, %c0_i32_0 : i32, i32
  }
  func.func @transform_11(%arg0: i32, %arg1: memref<1xi32, #tpu.memory_space<smem>>) -> (i32, i32) {
    %c0_i32 = arith.constant 0 : i32
    %c0_i32_0 = arith.constant 0 : i32
    %c0_i32_1 = arith.constant 0 : i32
    return %c0_i32, %c0_i32_0 : i32, i32
  }
  func.func @transform_12(%arg0: i32, %arg1: memref<1xi32, #tpu.memory_space<smem>>) -> (i32, i32) {
    %c0_i32 = arith.constant 0 : i32
    %c0_i32_0 = arith.constant 0 : i32
    %c0_i32_1 = arith.constant 0 : i32
    return %c0_i32, %c0_i32_0 : i32, i32
  }
  func.func @transform_13(%arg0: i32, %arg1: memref<1xi32, #tpu.memory_space<smem>>) -> (i32, i32) {
    %c0_i32 = arith.constant 0 : i32
    %c0_i32_0 = arith.constant 0 : i32
    %c0_i32_1 = arith.constant 0 : i32
    return %c0_i32, %c0_i32_0 : i32, i32
  }
  func.func @transform_14(%arg0: i32, %arg1: memref<1xi32, #tpu.memory_space<smem>>) -> (i32, i32) {
    %c0_i32 = arith.constant 0 : i32
    %c0_i32_0 = arith.constant 0 : i32
    %c0_i32_1 = arith.constant 0 : i32
    return %c0_i32, %c0_i32_0 : i32, i32
  }
  func.func @transform_15(%arg0: i32, %arg1: memref<1xi32, #tpu.memory_space<smem>>) -> (i32, i32) {
    %c0_i32 = arith.constant 0 : i32
    %c0_i32_0 = arith.constant 0 : i32
    %c0_i32_1 = arith.constant 0 : i32
    return %c0_i32, %c0_i32_0 : i32, i32
  }
  func.func @transform_16(%arg0: i32, %arg1: memref<1xi32, #tpu.memory_space<smem>>) -> (i32, i32) {
    %c0_i32 = arith.constant 0 : i32
    %c0_i32_0 = arith.constant 0 : i32
    %c0_i32_1 = arith.constant 0 : i32
    return %c0_i32, %c0_i32_0 : i32, i32
  }
  func.func @transform_17(%arg0: i32, %arg1: memref<1xi32, #tpu.memory_space<smem>>) -> (i32, i32) {
    %c0_i32 = arith.constant 0 : i32
    %c0_i32_0 = arith.constant 0 : i32
    %c0_i32_1 = arith.constant 0 : i32
    return %c0_i32, %c0_i32_0 : i32, i32
  }
  func.func @transform_18(%arg0: i32, %arg1: memref<1xi32, #tpu.memory_space<smem>>) -> (i32, i32) {
    %c0_i32 = arith.constant 0 : i32
    %c0_i32_0 = arith.constant 0 : i32
    %c0_i32_1 = arith.constant 0 : i32
    return %c0_i32, %c0_i32_0 : i32, i32
  }
  func.func @transform_19(%arg0: i32, %arg1: memref<1xi32, #tpu.memory_space<smem>>) -> (i32, i32) {
    %c0_i32 = arith.constant 0 : i32
    %c0_i32_0 = arith.constant 0 : i32
    %c0_i32_1 = arith.constant 0 : i32
    return %c0_i32, %c0_i32_0 : i32, i32
  }
  func.func @transform_20(%arg0: i32, %arg1: memref<1xi32, #tpu.memory_space<smem>>) -> (i32, i32) {
    %c0_i32 = arith.constant 0 : i32
    %c0_i32_0 = arith.constant 0 : i32
    %c0_i32_1 = arith.constant 0 : i32
    return %c0_i32, %c0_i32_0 : i32, i32
  }
  func.func @transform_21(%arg0: i32, %arg1: memref<1xi32, #tpu.memory_space<smem>>) -> (i32, i32) {
    %c0_i32 = arith.constant 0 : i32
    %c0_i32_0 = arith.constant 0 : i32
    %c0_i32_1 = arith.constant 0 : i32
    return %c0_i32, %c0_i32_0 : i32, i32
  }
  func.func @transform_22(%arg0: i32, %arg1: memref<1xi32, #tpu.memory_space<smem>>) -> (i32, i32) {
    %c0_i32 = arith.constant 0 : i32
    %c0_i32_0 = arith.constant 0 : i32
    %c0_i32_1 = arith.constant 0 : i32
    return %c0_i32, %c0_i32_0 : i32, i32
  }
  func.func @transform_23(%arg0: i32, %arg1: memref<1xi32, #tpu.memory_space<smem>>) -> (i32, i32, i32) {
    %c0_i32 = arith.constant 0 : i32
    %c0_i32_0 = arith.constant 0 : i32
    %c0_i32_1 = arith.constant 0 : i32
    return %arg0, %c0_i32, %c0_i32_0 : i32, i32, i32
  }
  func.func @transform_24(%arg0: i32, %arg1: memref<1xi32, #tpu.memory_space<smem>>) -> (i32, i32, i32) {
    %c0_i32 = arith.constant 0 : i32
    %c0_i32_0 = arith.constant 0 : i32
    %c0_i32_1 = arith.constant 0 : i32
    return %arg0, %c0_i32, %c0_i32_0 : i32, i32, i32
  }
  func.func @transform_25(%arg0: i32, %arg1: memref<1xi32, #tpu.memory_space<smem>>) -> (i32, i32, i32) {
    %c0_i32 = arith.constant 0 : i32
    %c0_i32_0 = arith.constant 0 : i32
    %c0_i32_1 = arith.constant 0 : i32
    return %arg0, %c0_i32, %c0_i32_0 : i32, i32, i32
  }
}

</mosaic_0001>

<bundles_post_ra>
// kernel: transformer_decoder_forward.3
= control target key start
LH: loop header
LB: loop body
LE: loop exit
PB: predicated region body
PF: predicated region fallthrough
CT: control target
= control target key end

     0   :  { %s595_s21 = smov 0   ;;  %s644_s0 = inlined_call_operand.vmem [shape: bf16[2,16,32], index: 0, kind: input, shape index: {}]   ;;  %s645_s1 = inlined_call_operand.vmem [shape: f32[1,32], index: 1, kind: input, shape index: {}]   ;;  %s646_s2 = inlined_call_operand.vmem [shape: f32[1,32], index: 2, kind: input, shape index: {}]   ;;  %s647_s3 = inlined_call_operand.vmem [shape: bf16[32,64], index: 3, kind: input, shape index: {}]   ;;  %s648_s4 = inlined_call_operand.vmem [shape: f32[1,64], index: 4, kind: input, shape index: {}]   ;;  %s649_s5 = inlined_call_operand.vmem [shape: bf16[2,16,32], index: 5, kind: output, shape index: {0}]   ;;  %s650_s6 = inlined_call_operand.vmem [shape: bf16[2,16,32], index: 6, kind: output, shape index: {1}]  }
   0x1 LB: > { %s491_s22 = sadd.s32 4294967295, %s555_s21   ;;  %p495_p0 = scmp.ge.s32.totalorder %s555_s21, 1  ;;  %s555_s21 = sphi %s595_s21, %s17_s21  }
   0x2   : > { %p215_p1 = scmp.lt.s32.totalorder %s555_s21, 3 }
   0x4   : > { %p216_p2 = pnand %p495_p0, %p215_p1 }
   0x5   : > { %p250_p3 = scmp.lt.s32.totalorder (!%p216_p2), %s491_s22, 1  ;;  %s559_s16 = smov (!%p216_p2), 96  }
   0x6   : > { %219 = sbr.rel (%p216_p2) target bundleno = 648 (0x288), region = 40 }
   0xb   : > { %s652_s22 = smov (!%p250_p3, %s491_s22), 1  ;;  %vm272_vm0 = vcmask 261120   ;;  %v543_v15 = vld [vmem:[%s647_s3 + $0x8] sm:$0xff]   ;;  %v557_v16 = vmov 0.0   ;;  %vm558_vm1 = vmmov 0   ;;  %v544_v17 = vld [vmem:[%s647_s3] sm:$0xff]  }
   0xc   : > { %s603_s23 = sshll.u32 %s652_s22, 3  ;;  %524 = vmatprep.subr.bf16.mxu0 %v557_v16  ;;  %528 = vmatprep.mubr.msk.bf16.mxu0 %vm558_vm1, %v557_v16  ;;  %v502_v26 = vld [vmem:[%s645_s1] ss:$0 sm:$0xff]  ;;  %vm392_vm2 = vcmask 257024  }
   0xd   : > { %s254_s26 = scalar_lea.vmem %s644_s0, %s603_s23  ;;  %525 = vmatpush3.bf16.msra.mxu0 %v543_v15  ;;  %v503_v30 = vld [vmem:[%s646_s2] ss:$0 sm:$0xff]  ;;  %s259_s15 = scalar_lea.vmem %s649_s5, %s603_s23 }
   0xe   : > { %v518_v0 = vld [vmem:[%s254_s26] sm:$0xff]   ;;  %526 = vmatprep.subr.bf16.mxu0 %v557_v16  ;;  %s264_s19 = scalar_lea.vmem %s650_s6, %s603_s23 }
   0xf   : > { %v519_v1 = vunpack.c.l.bf16 %v518_v0  ;;  %v520_v2 = vunpack.c.h.bf16 %v518_v0  ;;  %v504_v35 = vld [vmem:[%s648_s4] ss:$0 sm:$0xff] }
  0x11   : > { %v273_v3 = vsel %vm272_vm0, %v519_v1, 0.0  ;;  %v276_v4 = vsel %vm272_vm0, %v520_v2, 0.0  ;;  %527 = vmatpush3.bf16.msra.mxu0 %v544_v17 }
  0x12   : > { %274 = vadd.xlane.f32.xlu0 %v273_v3 }
  0x16   : > { %277 = vadd.xlane.f32.xlu0 %v276_v4 }
  0x9b   : > { %v275_v5 = vpop.xlane.xlu0 %274 }
  0x9c   : > { %v280_v6 = vmul.f32 0.03125, %v275_v5 }
  0x9e   : > { %v282_v7 = vsub.f32 %v519_v1, %v280_v6 }
  0x9f   : > { %v278_v8 = vpop.xlane.xlu0 %277 }
  0xa0   : > { %v281_v9 = vmul.f32 0.03125, %v278_v8  ;;  %v284_v10 = vmul.f32 %v282_v7, %v282_v7 }
  0xa2   : > { %v283_v11 = vsub.f32 %v520_v2, %v281_v9  ;;  %v286_v12 = vsel %vm272_vm0, %v284_v10, 0.0 }
  0xa3   : > { %287 = vadd.xlane.f32.xlu1 %v286_v12 }
  0xa4   : > { %v285_v13 = vmul.f32 %v283_v11, %v283_v11 }
  0xa6   : > { %v289_v14 = vsel %vm272_vm0, %v285_v13, 0.0 }
  0xa7   : > { %290 = vadd.xlane.f32.xlu1 %v289_v14 }
 0x12c   : > { %v288_v18 = vpop.xlane.xlu1 %287 }
 0x12d   : > { %v292_v19 = vmul.f32 0.03125, %v288_v18 }
 0x12f   : > { %v294_v20 = vadd.f32 1e-05, %v292_v19 }
 0x130   : > { %v291_v21 = vpop.xlane.xlu1 %290 }
 0x131   : > { %545 = vrsqrt.f32 %v294_v20  ;;  %v293_v22 = vmul.f32 0.03125, %v291_v21 }
 0x133   : > { %v295_v23 = vadd.f32 1e-05, %v293_v22 }
 0x135   : > { %547 = vrsqrt.f32 %v295_v23 }
 0x13e   : > { %v546_v24 = vpop.eup %545 }
 0x13f   : > { %v298_v25 = vmul.f32 %v546_v24, %v282_v7 }
 0x141   : > { %v306_v29 = vmul.f32 %v502_v26, %v298_v25 }
 0x142   : > { %v548_v27 = vpop.eup %547 }
 0x143   : > { %v299_v28 = vmul.f32 %v548_v27, %v283_v11  ;;  %v314_v32 = vadd.f32 %v503_v30, %v306_v29 }
 0x145   : > { %v307_v31 = vmul.f32 %v502_v26, %v299_v28 }
 0x147   : > { %v315_v33 = vadd.f32 %v503_v30, %v307_v31 }
 0x149   : > { %v316_v34 = vpack.c.bf16 %v315_v33, %v314_v32 }
 0x14b   : > { %529 = vmatmul.mubr.msk.bf16.vlgmr.msra.gmra.mxu0 %vm272_vm0, %v316_v34 }
 0x20b   : > { %v377_v36 = vpop.f32.mrf.mxu0 }
 0x20c   : > { %v378_v37 = vadd.f32 %v504_v35, %v377_v36 }
 0x20d   : > { %v530_v38 = vpop.f32.mrf.mxu0 }
 0x20e   : > { %v515_v39 = vpack.c.bf16 %v378_v37, %v378_v37 }
 0x20f   : > { %v380_v40 = vpop.f32.mrf.mxu0 }
 0x210   : > { %393 = vst.msk [vmem:[%s259_s15] sm:$0xf] %vm392_vm2, %v515_v39  ;;  %v381_v41 = vadd.f32 %v504_v35, %v380_v40  ;;  %395 = vrot.lane.b32.xlu0 %v515_v39, %s559_s16 }
 0x211   : > { %v531_v42 = vpop.f32.mrf.mxu0 }
 0x212   : > { %v516_v43 = vpack.c.bf16 %v381_v41, %v381_v41 }
 0x214   : > { %394 = vst.msk [vmem:[%s259_s15 + $0x4] sm:$0xf] %vm392_vm2, %v516_v43  ;;  %397 = vrot.lane.b32.xlu1 %v516_v43, %s559_s16 }
 0x282   : > { %v396_v44 = vpop.permute.xlu0 %395 }
 0x283   : > { %401 = vst.msk [vmem:[%s264_s19] sm:$0xf] %vm392_vm2, %v396_v44 }
 0x286   : > { %v398_v45 = vpop.permute.xlu1 %397 }
 0x287   : > { %402 = vst.msk [vmem:[%s264_s19 + $0x4] sm:$0xf] %vm392_vm2, %v398_v45 }
 0x288 PF: > { %s17_s21 = sadd.s32 1, %s555_s21  }
 0x289   : > { %p14_p4 = scmp.ge.s32.totalorder %s17_s21, 4  }
 0x28b   :  { %16 = sbr.rel (!%p14_p4) target bundleno = 1 (0x1), region = 82 }

// kernel: closed_call.30
= control target key start
LH: loop header
LB: loop body
LE: loop exit
PB: predicated region body
PF: predicated region fallthrough
CT: control target
= control target key end

     0   :  { %vm26_vm0 = vcmask 254976   ;;  %v192_v9 = vmov 0.0   ;;  %vm193_vm1 = vmmov 0   ;;  %vm56_vm2 = vcmask 253952   ;;  %s248_s0 = inlined_call_operand.vmem [shape: bf16[2,32], index: 0, kind: input, shape index: {}]   ;;  %s249_s3 = inlined_call_operand.vmem [shape: bf16[32,128], index: 3, kind: input, shape index: {}]   ;;  %s250_s1 = inlined_call_operand.vmem [shape: f32[1,32], index: 1, kind: input, shape index: {}]   ;;  %s251_s2 = inlined_call_operand.vmem [shape: f32[1,32], index: 2, kind: input, shape index: {}]   ;;  %s252_s4 = inlined_call_operand.vmem [shape: s32[2,1], index: 4, kind: output, shape index: {}]  }
   0x1   :  { %v22_v0 = vld [vmem:[%s248_s0] sm:$0x1]  ;;  %v188_v8 = vld [vmem:[%s249_s3 + $0x8] sm:$0xff]   ;;  %176 = vmatprep.subr.bf16.mxu0 %v192_v9  ;;  %180 = vmatprep.mubr.msk.bf16.mxu0 %vm193_vm1, %v192_v9  ;;  %vm78_vm3 = vcmask 261120   ;;  %vm58_vm4 = vcmask 1024   ;;  %v194_v22 = vmov -inf   ;;  %v122_v23 = vlaneseq }
   0x2   :  { %v23_v1 = vunpack.c.l.bf16 %v22_v0  ;;  %177 = vmatpush3.bf16.msra.mxu0 %v188_v8  ;;  %v189_v10 = vld [vmem:[%s249_s3] sm:$0xff]   ;;  %59 = vst.msk [vmem:[#allocation3] sm:$0x3] %vm58_vm4, %v194_v22  ;;  %vm129_vm6 = vcmask 1041408   ;;  %v195_v39 = vmov 0  }
   0x3   :  { %178 = vmatprep.subr.bf16.mxu0 %v192_v9  ;;  %v168_v15 = vld [vmem:[%s250_s1] ss:$0 sm:$0xff]  ;;  %v123_v24 = vand.u32 127, %v122_v23  ;;  %60 = vst.msk [vmem:[#allocation4] sm:$0x3] %vm58_vm4, %v195_v39 }
   0x4   :  { %v27_v2 = vsel %vm26_vm0, %v23_v1, 0.0  ;;  %v169_v17 = vld [vmem:[%s251_s2] ss:$0 sm:$0xff] }
   0x5   :  { %28 = vadd.xlane.f32.xlu0 %v27_v2  ;;  %vm127_vm5 = vcmp.lt.s32.totalorder %v123_v24, 16 }
   0x6   :  { %179 = vmatpush3.bf16.msra.mxu0 %v189_v10 }
   0x9   :  { %v150_v31 = vld [vmem:[#allocation3] sm:$0x3] }
   0xa   :  { %v156_v32 = vld [vmem:[#allocation3] sm:$0x3]  ;;  %v152_v48 = vld [vmem:[#allocation4] sm:$0x3] }
  0x8e   :  { %v29_v3 = vpop.xlane.xlu0 %28 }
  0x8f   :  { %v31_v4 = vmul.f32 0.03125, %v29_v3 }
  0x91   :  { %v32_v5 = vsub.f32 %v23_v1, %v31_v4 }
  0x93   :  { %v33_v6 = vmul.f32 %v32_v5, %v32_v5 }
  0x95   :  { %v34_v7 = vsel %vm26_vm0, %v33_v6, 0.0 }
  0x96   :  { %35 = vadd.xlane.f32.xlu0 %v34_v7 }
 0x11f   :  { %v36_v11 = vpop.xlane.xlu0 %35 }
 0x120   :  { %v37_v12 = vmul.f32 0.03125, %v36_v11 }
 0x122   :  { %v38_v13 = vadd.f32 1e-05, %v37_v12 }
 0x124   :  { %190 = vrsqrt.f32 %v38_v13 }
 0x131   :  { %v191_v14 = vpop.eup %190 }
 0x132   :  { %v40_v16 = vmul.f32 %v191_v14, %v32_v5 }
 0x134   :  { %v47_v18 = vmul.f32 %v168_v15, %v40_v16 }
 0x136   :  { %v54_v19 = vadd.f32 %v169_v17, %v47_v18 }
 0x138   :  { %v55_v20 = vpack.c.bf16 %v54_v19, %v54_v19 }
 0x13a   :  { %57 = vst.msk [vmem:[#allocation2] sm:$0x1] %vm56_vm2, %v55_v20 }
 0x141   :  { %v61_v21 = vld [vmem:[#allocation2] sm:$0x1] }
 0x142   :  { %181 = vmatmul.mubr.msk.bf16.vlgmr.msra.gmra.mxu0 %vm78_vm3, %v61_v21 }
 0x202   :  { %v116_v25 = vpop.f32.mrf.mxu0 }
 0x203   :  { %v128_v26 = vsel %vm127_vm5, %v116_v25, -inf }
 0x204   :  { %v182_v27 = vpop.f32.mrf.mxu0  ;;  %v130_v28 = vsel %vm129_vm6, %v128_v26, -inf }
 0x205   :  { %131 = vmax.xlane.f32.xlu1 %v130_v28 }
 0x206   :  { %v119_v29 = vpop.f32.mrf.mxu0 }
 0x208   :  { %v183_v30 = vpop.f32.mrf.mxu0 }
 0x28e   :  { %v132_v33 = vpop.xlane.xlu1 %131 }
 0x28f   :  { %vm133_vm7 = vcmp.eq.f32.partialorder %v128_v26, %v132_v33  ;;  %vm151_vm8 = vcmp.gt.f32.partialorder %v132_v33, %v150_v31 }
 0x290   :  { %v157_v34 = vsel %vm151_vm8, %v132_v33, %v156_v32  ;;  %v134_v35 = vsel %vm133_vm7, %v123_v24, 2147483647 }
 0x291   :  { %158 = vst.msk [vmem:[#allocation3] sm:$0x3] %vm58_vm4, %v157_v34  ;;  %v135_v36 = vsel %vm129_vm6, %v134_v35, 2147483647 }
 0x292   :  { %v137_v37 = vshra.s32 %v135_v36, 16  ;;  %v136_v40 = vand.u32 65535, %v135_v36 }
 0x294   :  { %v139_v38 = vcvt.s32.f32 %v137_v37  ;;  %v138_v42 = vcvt.s32.f32 %v136_v40 }
 0x296   :  { %140 = vmin.xlane.f32.xlu1 %v139_v38 }
 0x31f   :  { %v141_v41 = vpop.xlane.xlu1 %140 }
 0x320   :  { %vm142_vm9 = vcmp.eq.f32.partialorder %v139_v38, %v141_v41  ;;  %v147_v44 = vcvt.f32.s32 %v141_v41 }
 0x321   :  { %v143_v43 = vsel %vm142_vm9, %v138_v42, inf }
 0x322   :  { %144 = vmin.xlane.f32.xlu0 %v143_v43  ;;  %v148_v46 = vshll.u32 %v147_v44, 16 }
 0x3ab   :  { %v145_v45 = vpop.xlane.xlu0 %144 }
 0x3ac   :  { %v146_v47 = vcvt.f32.s32 %v145_v45 }
 0x3ae   :  { %v149_v49 = vadd.s32 %v148_v46, %v146_v47 }
 0x3b0   :  { %v153_v50 = vsel %vm151_vm8, %v149_v49, %v152_v48 }
 0x3b1   :  { %155 = vst.msk [vmem:[#allocation4] sm:$0x3] %vm58_vm4, %v153_v50 }
 0x3b8   :  { %v162_v51 = vld [vmem:[#allocation4] sm:$0x3] }
 0x3b9   :  { %163 = vst.msk [vmem:[%s252_s4] sm:$0x3] %vm58_vm4, %v162_v51 }

// kernel: transformer_decoder_forward.2
= control target key start
LH: loop header
LB: loop body
LE: loop exit
PB: predicated region body
PF: predicated region fallthrough
CT: control target
= control target key end

     0   :  { %s1302_s25 = smov 0   ;;  %s1443_s0 = inlined_call_operand.vmem [shape: bf16[2,16,32], index: 0, kind: input, shape index: {}]   ;;  %s1444_s1 = inlined_call_operand.vmem [shape: bf16[32,96], index: 1, kind: input, shape index: {}]   ;;  %s1445_s2 = inlined_call_operand.vmem [shape: f32[1,96], index: 2, kind: input, shape index: {}]   ;;  %s1446_s3 = inlined_call_operand.vmem [shape: bf16[32,32], index: 3, kind: input, shape index: {}]   ;;  %s1447_s4 = inlined_call_operand.vmem [shape: f32[1,32], index: 4, kind: input, shape index: {}]   ;;  %s1448_s5 = inlined_call_operand.vmem [shape: f32[1,32], index: 5, kind: input, shape index: {}]   ;;  %s1449_s6 = inlined_call_operand.vmem [shape: f32[1,32], index: 6, kind: input, shape index: {}]   ;;  %s1450_s7 = inlined_call_operand.vmem [shape: bf16[32,128], index: 7, kind: input, shape index: {}]   ;;  %s1451_s8 = inlined_call_operand.vmem [shape: f32[1,128], index: 8, kind: input, shape index: {}]   ;;  %s1452_s9 = inlined_call_operand.vmem [shape: bf16[128,32], index: 9, kind: input, shape index: {}]   ;;  %s1453_s10 = inlined_call_operand.vmem [shape: f32[1,32], index: 10, kind: input, shape index: {}]   ;;  %s1454_s11 = inlined_call_operand.vmem [shape: f32[1,32], index: 11, kind: input, shape index: {}]   ;;  %s1455_s12 = inlined_call_operand.vmem [shape: f32[1,32], index: 12, kind: input, shape index: {}]   ;;  %s1456_s13 = inlined_call_operand.vmem [shape: bf16[2,16,32], index: 13, kind: output, shape index: {}]  }
   0x1 LB: > { %s1053_s26 = sadd.s32 4294967295, %s1226_s25   ;;  %p1057_p0 = scmp.ge.s32.totalorder %s1226_s25, 1  ;;  %s1226_s25 = sphi %s1302_s25, %s23_s25  }
   0x2   : > { %p387_p1 = scmp.lt.s32.totalorder %s1226_s25, 3 }
   0x4   : > { %p388_p2 = pnand %p1057_p0, %p387_p1 }
   0x5   : > { %p431_p3 = scmp.lt.s32.totalorder (!%p388_p2), %s1053_s26, 1  ;;  %s1230_s20 = smov (!%p388_p2), 96  }
   0x6   : > { %391 = sbr.rel (%p388_p2) target bundleno = 2282 (0x8ea), region = 72  ;;  %s1231_s21 = smov (!%p388_p2), 64  }
   0xb   : > { %v1188_v0 = vld [vmem:[%s1444_s1 + $0x8] sm:$0xff]   ;;  %v1228_v1 = vmov 0.0   ;;  %v1189_v2 = vld [vmem:[%s1444_s1] sm:$0xff]   ;;  %vm1229_vm0 = vmmov 0   ;;  %s1458_s26 = smov (!%p431_p3, %s1053_s26), 1  ;;  %vm474_vm1 = vcmask 261120  }
   0xc   : > { %1120 = vmatprep.subr.bf16.mxu0 %v1228_v1  ;;  %1140 = vmatprep.subr.bf16.mxu1 %v1228_v1  ;;  %s1094_s14 = sshll.u32 %s1458_s26, 3  ;;  %v1062_v5 = vld [vmem:[%s1445_s2] ss:$0 sm:$0xff]  ;;  %vm572_vm2 = vcmask 130048   ;;  %v1191_v40 = vld [vmem:[%s1446_s3 + $0x8] sm:$0xff]   ;;  %vm995_vm3 = vcmask 257024  }
   0xd   : > { %1121 = vmatpush3.bf16.msra.mxu0 %v1188_v0  ;;  %1124 = vmatprep.mubr.msk.bf16.mxu0 %vm1229_vm0, %v1228_v1  ;;  %s435_s17 = scalar_lea.vmem %s1443_s0, %s1094_s14  ;;  %v1192_v41 = vld [vmem:[%s1446_s3] sm:$0xff]  }
   0xe   : > { %1122 = vmatprep.subr.bf16.mxu0 %v1228_v1  ;;  %1144 = vmatprep.mubr.msk.bf16.mxu1 %vm1229_vm0, %v1228_v1  ;;  %v1332_v3 = vld [vmem:[%s435_s17] sm:$0xff]  }
   0xf   : > { %1141 = vmatpush3.bf16.msra.mxu1 %v1191_v40  ;;  %v1069_v47 = vld [vmem:[%s1447_s4] ss:$0 sm:$0xff]  ;;  %v444_v48 = vunpack.c.l.bf16 %v1332_v3  ;;  %v445_v53 = vunpack.c.h.bf16 %v1332_v3 }
  0x10   : > { %1142 = vmatprep.subr.bf16.mxu1 %v1228_v1 }
  0x11   : > { %1123 = vmatpush3.bf16.msra.mxu0 %v1189_v2 }
  0x12   : > { %1128 = vmatprep.subr.bf16.mxu0 %v1228_v1 }
  0x13   : > { %1143 = vmatpush3.bf16.msra.mxu1 %v1192_v41 }
  0x14   : > { %1125 = vmatmul.mubr.msk.bf16.vlgmr.msra.gmra.mxu0 %vm474_vm1, %v1332_v3  ;;  %1156 = vmatprep.subr.bf16.mxu1 %v1228_v1 }
  0x15   : > { %1130 = vmatprep.mubr.msk.bf16.mxu0 %vm1229_vm0, %v1228_v1 }
  0xd4   : > { %v512_v4 = vpop.f32.mrf.mxu0 }
  0xd5   : > { %v513_v8 = vadd.f32 %v1062_v5, %v512_v4 }
  0xd6   : > { %v1126_v6 = vpop.f32.mrf.mxu0 }
  0xd8   : > { %v515_v7 = vpop.f32.mrf.mxu0 }
  0xd9   : > { %v516_v9 = vadd.f32 %v1062_v5, %v515_v7  ;;  %v1193_v7 = vld [vmem:[%s1450_s7 + $0x8] sm:$0xff]  }
  0xda   : > { %v1127_v10 = vpop.f32.mrf.mxu0 }
  0xdb   : > { %v519_v11 = vpack.c.bf16 %v516_v9, %v513_v8  ;;  %v1194_v8 = vld [vmem:[%s1450_s7] sm:$0xff]   ;;  %v1195_v9 = vld [vmem:[%s1452_s9 + $0x38] sm:$0xff]   ;;  %v1196_v10 = vld [vmem:[%s1452_s9 + $0x30] sm:$0xff]  }
  0xdd   : > { %521 = vrot.lane.b32.xlu0 %v519_v11, %s1230_s20  ;;  %s440_s20 = scalar_lea.vmem %s1456_s13, %s1094_s14 }
 0x14f   : > { %v522_v12 = vpop.permute.xlu0 %521 }
 0x150   : > { %v527_v13 = vsel %vm474_vm1, %v522_v12, 0  ;;  %v1198_v12 = vld [vmem:[%s1452_s9 + $0x20] sm:$0xff]  }
 0x151   : > { %1129 = vmatpush3.bf16.xpose.msra.mxu0 %v527_v13  ;;  %v1199_v13 = vld [vmem:[%s1452_s9 + $0x18] sm:$0xff]  }
 0x152   : > { %1134 = vmatprep.subr.bf16.mxu0 %v1228_v1 }
 0x158   : > { %1131 = vmatmul.mubr.msk.bf16.vlgmr.msra.gmra.mxu0 %vm474_vm1, %v519_v11 }
 0x159   : > { %1136 = vmatprep.mubr.msk.bf16.mxu0 %vm1229_vm0, %v1228_v1 }
 0x218   : > { %v563_v14 = vpop.f32.mrf.mxu0 }
 0x219   : > { %v570_v15 = vmul.f32 0.17677669, %v563_v14 }
 0x21a   : > { %v1132_v16 = vpop.f32.mrf.mxu0 }
 0x21b   : > { %v573_v17 = vsel %vm572_vm2, %v570_v15, -inf }
 0x21c   : > { %574 = vmax.xlane.f32.xlu0 %v573_v17  ;;  %v566_v18 = vpop.f32.mrf.mxu0 }
 0x21d   : > { %v571_v19 = vmul.f32 0.17677669, %v566_v18 }
 0x21e   : > { %v1133_v20 = vpop.f32.mrf.mxu0 }
 0x21f   : > { %v576_v21 = vsel %vm572_vm2, %v571_v19, -inf }
 0x220   : > { %577 = vmax.xlane.f32.xlu1 %v576_v21 }
 0x2a5   : > { %v575_v22 = vpop.xlane.xlu0 %574 }
 0x2a6   : > { %v579_v23 = vsub.f32 %v570_v15, %v575_v22  ;;  %v1073_v22 = vld [vmem:[%s1448_s5] ss:$0 sm:$0xff] }
 0x2a8   : > { %v581_v24 = vmul.f32 1.442695, %v579_v23 }
 0x2a9   : > { %v578_v25 = vpop.xlane.xlu1 %577 }
 0x2aa   : > { %1204 = vpow2.f32 %v581_v24  ;;  %v580_v26 = vsub.f32 %v571_v19, %v578_v25 }
 0x2ac   : > { %v583_v27 = vmul.f32 1.442695, %v580_v26  ;;  %v1074_v26 = vld [vmem:[%s1449_s6] ss:$0 sm:$0xff] }
 0x2ae   : > { %1206 = vpow2.f32 %v583_v27 }
 0x2b7   : > { %v1205_v28 = vpop.eup %1204 }
 0x2b8   : > { %v585_v29 = vsel %vm572_vm2, %v1205_v28, 0.0 }
 0x2b9   : > { %586 = vadd.xlane.f32.xlu1 %v585_v29 }
 0x2bb   : > { %v1207_v30 = vpop.eup %1206 }
 0x2bc   : > { %v588_v31 = vsel %vm572_vm2, %v1207_v30, 0.0 }
 0x2bd   : > { %589 = vadd.xlane.f32.xlu1 %v588_v31  ;;  %v1200_v31 = vld [vmem:[%s1452_s9 + $0x10] sm:$0xff]  }
 0x2ce   : > { %596 = vrot.lane.b32.xlu1 %v519_v11, %s1231_s21  ;;  %v1197_v11 = vld [vmem:[%s1452_s9 + $0x28] sm:$0xff]  }
 0x342   : > { %v587_v32 = vpop.xlane.xlu1 %586 }
 0x343   : > { %1208 = vrcp.f32 %v587_v32  ;;  %v1201_v32 = vld [vmem:[%s1452_s9 + $0x8] sm:$0xff]  }
 0x346   : > { %v590_v33 = vpop.xlane.xlu1 %589 }
 0x347   : > { %1210 = vrcp.f32 %v590_v33  ;;  %v1202_v33 = vld [vmem:[%s1452_s9] sm:$0xff]  }
 0x34a   : > { %v597_v34 = vpop.permute.xlu1 %596 }
 0x34b   : > { %1135 = vmatpush3.bf16.msra.mxu0 %v597_v34  ;;  %v1075_v34 = vld [vmem:[%s1451_s8] ss:$0 sm:$0xff] }
 0x34c   : > { %1148 = vmatprep.subr.bf16.mxu0 %v1228_v1 }
 0x350   : > { %v1209_v35 = vpop.eup %1208 }
 0x351   : > { %v592_v37 = vmul.f32 %v1209_v35, %v1205_v28 }
 0x354   : > { %v1211_v36 = vpop.eup %1210 }
 0x355   : > { %v594_v38 = vmul.f32 %v1211_v36, %v1207_v30 }
 0x357   : > { %v595_v39 = vpack.c.bf16 %v594_v38, %v592_v37 }
 0x359   : > { %1137 = vmatmul.mubr.msk.bf16.vlgmr.msra.gmra.mxu0 %vm572_vm2, %v595_v39 }
 0x35a   : > { %1152 = vmatprep.mubr.msk.bf16.mxu0 %vm1229_vm0, %v1228_v1  ;;  %1149 = vmatpush3.bf16.msra.mxu0 %v1193_v7 }
 0x35b   : > { %1150 = vmatprep.subr.bf16.mxu0 %v1228_v1 }
 0x35e   : > { %1151 = vmatpush3.bf16.msra.mxu0 %v1194_v8  ;;  %v1088_v8 = vld [vmem:[%s1454_s11] ss:$0 sm:$0xff] }
 0x419   : > { %v636_v42 = vpop.f32.mrf.mxu0 }
 0x41b   : > { %v1138_v43 = vpop.f32.mrf.mxu0 }
 0x41d   : > { %v639_v44 = vpop.f32.mrf.mxu0 }
 0x41e   : > { %v643_v45 = vpack.c.bf16 %v639_v44, %v636_v42 }
 0x41f   : > { %v1139_v46 = vpop.f32.mrf.mxu0 }
 0x420   : > { %1145 = vmatmul.mubr.msk.bf16.vlgmr.msra.gmra.mxu1 %vm474_vm1, %v643_v45 }
 0x421   : > { %1172 = vmatprep.mubr.msk.bf16.mxu1 %vm1229_vm0, %v1228_v1  ;;  %1157 = vmatpush3.bf16.msra.mxu1 %v1195_v9 }
 0x422   : > { %1158 = vmatprep.subr.bf16.mxu1 %v1228_v1 }
 0x425   : > { %1159 = vmatpush3.bf16.msra.mxu1 %v1196_v10  ;;  %v1089_v10 = vld [vmem:[%s1455_s12] ss:$0 sm:$0xff] }
 0x426   : > { %1160 = vmatprep.subr.bf16.mxu1 %v1228_v1 }
 0x429   : > { %1161 = vmatpush3.bf16.msra.mxu1 %v1197_v11 }
 0x42a   : > { %1162 = vmatprep.subr.bf16.mxu1 %v1228_v1 }
 0x42d   : > { %1163 = vmatpush3.bf16.msra.mxu1 %v1198_v12 }
 0x42e   : > { %1164 = vmatprep.subr.bf16.mxu1 %v1228_v1 }
 0x431   : > { %1165 = vmatpush3.bf16.msra.mxu1 %v1199_v13 }
 0x432   : > { %1166 = vmatprep.subr.bf16.mxu1 %v1228_v1 }
 0x435   : > { %1167 = vmatpush3.bf16.msra.mxu1 %v1200_v31 }
 0x436   : > { %1168 = vmatprep.subr.bf16.mxu1 %v1228_v1 }
 0x439   : > { %1169 = vmatpush3.bf16.msra.mxu1 %v1201_v32 }
 0x43a   : > { %1170 = vmatprep.subr.bf16.mxu1 %v1228_v1  ;;  %v1079_v1 = vld [vmem:[%s1453_s10] ss:$0 sm:$0xff] }
 0x43d   : > { %1171 = vmatpush3.bf16.msra.mxu1 %v1202_v33 }
 0x4e0   : > { %v704_v49 = vpop.f32.mrf.mxu1 }
 0x4e1   : > { %v705_v50 = vadd.f32 %v1069_v47, %v704_v49 }
 0x4e2   : > { %v1146_v51 = vpop.f32.mrf.mxu1 }
 0x4e3   : > { %v711_v52 = vadd.f32 %v705_v50, %v444_v48 }
 0x4e4   : > { %v707_v54 = vpop.f32.mrf.mxu1 }
 0x4e5   : > { %v708_v55 = vadd.f32 %v1069_v47, %v707_v54  ;;  %v715_v56 = vsel %vm474_vm1, %v711_v52, 0.0 }
 0x4e6   : > { %v1147_v57 = vpop.f32.mrf.mxu1  ;;  %716 = vadd.xlane.f32.xlu1 %v715_v56 }
 0x4e7   : > { %v712_v58 = vadd.f32 %v708_v55, %v445_v53 }
 0x4e9   : > { %v718_v59 = vsel %vm474_vm1, %v712_v58, 0.0 }
 0x4ea   : > { %719 = vadd.xlane.f32.xlu0 %v718_v59 }
 0x56f   : > { %v717_v60 = vpop.xlane.xlu1 %716 }
 0x570   : > { %v722_v61 = vmul.f32 0.03125, %v717_v60 }
 0x572   : > { %v724_v62 = vsub.f32 %v711_v52, %v722_v61 }
 0x573   : > { %v720_v63 = vpop.xlane.xlu0 %719 }
 0x574   : > { %v723_v0 = vmul.f32 0.03125, %v720_v63  ;;  %v726_v2 = vmul.f32 %v724_v62, %v724_v62 }
 0x576   : > { %v725_v4 = vsub.f32 %v712_v58, %v723_v0  ;;  %v728_v5 = vsel %vm474_vm1, %v726_v2, 0.0 }
 0x577   : > { %729 = vadd.xlane.f32.xlu0 %v728_v5 }
 0x578   : > { %v727_v3 = vmul.f32 %v725_v4, %v725_v4 }
 0x57a   : > { %v731_v6 = vsel %vm474_vm1, %v727_v3, 0.0 }
 0x57b   : > { %732 = vadd.xlane.f32.xlu0 %v731_v6 }
 0x600   : > { %v730_v14 = vpop.xlane.xlu0 %729 }
 0x601   : > { %v734_v15 = vmul.f32 0.03125, %v730_v14 }
 0x603   : > { %v736_v16 = vadd.f32 1e-05, %v734_v15 }
 0x604   : > { %v733_v17 = vpop.xlane.xlu0 %732 }
 0x605   : > { %1212 = vrsqrt.f32 %v736_v16  ;;  %v735_v18 = vmul.f32 0.03125, %v733_v17 }
 0x607   : > { %v737_v19 = vadd.f32 1e-05, %v735_v18 }
 0x609   : > { %1214 = vrsqrt.f32 %v737_v19 }
 0x612   : > { %v1213_v20 = vpop.eup %1212 }
 0x613   : > { %v740_v21 = vmul.f32 %v1213_v20, %v724_v62 }
 0x615   : > { %v748_v25 = vmul.f32 %v1073_v22, %v740_v21 }
 0x616   : > { %v1215_v23 = vpop.eup %1214 }
 0x617   : > { %v741_v24 = vmul.f32 %v1215_v23, %v725_v4  ;;  %v756_v28 = vadd.f32 %v1074_v26, %v748_v25 }
 0x619   : > { %v749_v27 = vmul.f32 %v1073_v22, %v741_v24 }
 0x61b   : > { %v757_v29 = vadd.f32 %v1074_v26, %v749_v27 }
 0x61d   : > { %v758_v30 = vpack.c.bf16 %v757_v29, %v756_v28 }
 0x61f   : > { %1153 = vmatmul.mubr.msk.bf16.vlgmr.msra.gmra.mxu0 %vm474_vm1, %v758_v30 }
 0x6df   : > { %v819_v35 = vpop.f32.mrf.mxu0 }
 0x6e0   : > { %v820_v37 = vadd.f32 %v1075_v34, %v819_v35 }
 0x6e1   : > { %v1154_v36 = vpop.f32.mrf.mxu0 }
 0x6e2   : > { %v826_v41 = vmax.f32 %v820_v37, 0.0 }
 0x6e3   : > { %v822_v38 = vpop.f32.mrf.mxu0 }
 0x6e4   : > { %v823_v39 = vadd.f32 %v1075_v34, %v822_v38 }
 0x6e5   : > { %v1155_v40 = vpop.f32.mrf.mxu0 }
 0x6e6   : > { %v827_v42 = vmax.f32 %v823_v39, 0.0 }
 0x6e8   : > { %v828_v43 = vpack.c.bf16 %v827_v42, %v826_v41 }
 0x6ea   : > { %1173 = vmatmul.mubr.bf16.vlgmr.msra.gmra.mxu1 %v828_v43 }
 0x7aa   : > { %v934_v44 = vpop.f32.mrf.mxu1 }
 0x7ab   : > { %v935_v45 = vadd.f32 %v1079_v1, %v934_v44 }
 0x7ac   : > { %v1174_v46 = vpop.f32.mrf.mxu1 }
 0x7ad   : > { %v941_v47 = vadd.f32 %v935_v45, %v756_v28 }
 0x7ae   : > { %v937_v48 = vpop.f32.mrf.mxu1 }
 0x7af   : > { %v938_v49 = vadd.f32 %v1079_v1, %v937_v48  ;;  %v945_v50 = vsel %vm474_vm1, %v941_v47, 0.0 }
 0x7b0   : > { %946 = vadd.xlane.f32.xlu0 %v945_v50  ;;  %v1175_v51 = vpop.f32.mrf.mxu1 }
 0x7b1   : > { %v942_v52 = vadd.f32 %v938_v49, %v757_v29 }
 0x7b3   : > { %v948_v53 = vsel %vm474_vm1, %v942_v52, 0.0 }
 0x7b4   : > { %949 = vadd.xlane.f32.xlu0 %v948_v53 }
 0x839   : > { %v947_v54 = vpop.xlane.xlu0 %946 }
 0x83a   : > { %v951_v55 = vmul.f32 0.03125, %v947_v54 }
 0x83c   : > { %v953_v56 = vsub.f32 %v941_v47, %v951_v55 }
 0x83d   : > { %v950_v57 = vpop.xlane.xlu0 %949 }
 0x83e   : > { %v952_v58 = vmul.f32 0.03125, %v950_v57  ;;  %v955_v59 = vmul.f32 %v953_v56, %v953_v56 }
 0x840   : > { %v954_v60 = vsub.f32 %v942_v52, %v952_v58  ;;  %v957_v61 = vsel %vm474_vm1, %v955_v59, 0.0 }
 0x841   : > { %958 = vadd.xlane.f32.xlu0 %v957_v61 }
 0x842   : > { %v956_v62 = vmul.f32 %v954_v60, %v954_v60 }
 0x844   : > { %v960_v63 = vsel %vm474_vm1, %v956_v62, 0.0 }
 0x845   : > { %961 = vadd.xlane.f32.xlu0 %v960_v63 }
 0x8ca   : > { %v959_v0 = vpop.xlane.xlu0 %958 }
 0x8cb   : > { %v963_v2 = vmul.f32 0.03125, %v959_v0 }
 0x8cd   : > { %v965_v4 = vadd.f32 1e-05, %v963_v2 }
 0x8ce   : > { %v962_v5 = vpop.xlane.xlu0 %961 }
 0x8cf   : > { %1216 = vrsqrt.f32 %v965_v4  ;;  %v964_v3 = vmul.f32 0.03125, %v962_v5 }
 0x8d1   : > { %v966_v6 = vadd.f32 1e-05, %v964_v3 }
 0x8d3   : > { %1218 = vrsqrt.f32 %v966_v6 }
 0x8dc   : > { %v1217_v7 = vpop.eup %1216 }
 0x8dd   : > { %v969_v9 = vmul.f32 %v1217_v7, %v953_v56 }
 0x8df   : > { %v977_v11 = vmul.f32 %v1088_v8, %v969_v9 }
 0x8e0   : > { %v1219_v12 = vpop.eup %1218 }
 0x8e1   : > { %v985_v13 = vadd.f32 %v1089_v10, %v977_v11  ;;  %v970_v14 = vmul.f32 %v1219_v12, %v954_v60 }
 0x8e3   : > { %v1096_v15 = vpack.c.bf16 %v985_v13, %v985_v13  ;;  %v978_v16 = vmul.f32 %v1088_v8, %v970_v14 }
 0x8e5   : > { %996 = vst.msk [vmem:[%s440_s20] sm:$0xf] %vm995_vm3, %v1096_v15  ;;  %v986_v17 = vadd.f32 %v1089_v10, %v978_v16 }
 0x8e7   : > { %v1097_v18 = vpack.c.bf16 %v986_v17, %v986_v17 }
 0x8e9   : > { %997 = vst.msk [vmem:[%s440_s20 + $0x4] sm:$0xf] %vm995_vm3, %v1097_v18 }
 0x8ea PF: > { %s23_s25 = sadd.s32 1, %s1226_s25  }
 0x8eb   : > { %p20_p4 = scmp.ge.s32.totalorder %s23_s25, 4  }
 0x8ed   :  { %22 = sbr.rel (!%p20_p4) target bundleno = 1 (0x1), region = 102 }

// kernel: closed_call.29
= control target key start
LH: loop header
LB: loop body
LE: loop exit
PB: predicated region body
PF: predicated region fallthrough
CT: control target
= control target key end

     0   :  { %s2181_s28 = smov 0   ;;  %s2420_s0 = inlined_call_operand.<no memory space> [shape: s32[1], index: 0, kind: input, shape index: {}]   ;;  %s2421_s1 = inlined_call_operand.vmem [shape: bf16[2,1,32], index: 1, kind: input, shape index: {}]   ;;  %s2422_s2 = inlined_call_operand.vmem [shape: bf16[2,16,32], index: 2, kind: input, shape index: {}]   ;;  %s2423_s3 = inlined_call_operand.vmem [shape: bf16[2,16,32], index: 3, kind: input, shape index: {}]   ;;  %s2424_s4 = inlined_call_operand.vmem [shape: bf16[2,16,32], index: 4, kind: input, shape index: {}]   ;;  %s2425_s5 = inlined_call_operand.vmem [shape: bf16[2,16,32], index: 5, kind: input, shape index: {}]   ;;  %s2426_s6 = inlined_call_operand.vmem [shape: bf16[32,96], index: 6, kind: input, shape index: {}]   ;;  %s2427_s7 = inlined_call_operand.vmem [shape: f32[1,96], index: 7, kind: input, shape index: {}]   ;;  %s2428_s8 = inlined_call_operand.vmem [shape: bf16[32,32], index: 8, kind: input, shape index: {}]   ;;  %s2429_s9 = inlined_call_operand.vmem [shape: f32[1,32], index: 9, kind: input, shape index: {}]   ;;  %s2430_s10 = inlined_call_operand.vmem [shape: f32[1,32], index: 10, kind: input, shape index: {}]   ;;  %s2431_s11 = inlined_call_operand.vmem [shape: f32[1,32], index: 11, kind: input, shape index: {}]   ;;  %s2432_s12 = inlined_call_operand.vmem [shape: bf16[32,32], index: 12, kind: input, shape index: {}]   ;;  %s2433_s13 = inlined_call_operand.vmem [shape: f32[1,32], index: 13, kind: input, shape index: {}]   ;;  %s2434_s14 = inlined_call_operand.vmem [shape: bf16[32,32], index: 14, kind: input, shape index: {}]   ;;  %s2435_s15 = inlined_call_operand.vmem [shape: f32[1,32], index: 15, kind: input, shape index: {}]   ;;  %s2436_s16 = inlined_call_operand.vmem [shape: f32[1,32], index: 16, kind: input, shape index: {}]   ;;  %s2437_s17 = inlined_call_operand.vmem [shape: f32[1,32], index: 17, kind: input, shape index: {}]   ;;  %s2438_s18 = inlined_call_operand.vmem [shape: bf16[32,128], index: 18, kind: input, shape index: {}]   ;;  %s2439_s19 = inlined_call_operand.vmem [shape: f32[1,128], index: 19, kind: input, shape index: {}]   ;;  %s2440_s20 = inlined_call_operand.vmem [shape: bf16[128,32], index: 20, kind: input, shape index: {}]   ;;  %s2441_s21 = inlined_call_operand.vmem [shape: f32[1,32], index: 21, kind: input, shape index: {}]   ;;  %s2442_s22 = inlined_call_operand.vmem [shape: f32[1,32], index: 22, kind: input, shape index: {}]   ;;  %s2443_s23 = inlined_call_operand.vmem [shape: f32[1,32], index: 23, kind: input, shape index: {}]   ;;  %s2444_s24 = inlined_call_operand.vmem [shape: bf16[2,1,32], index: 24, kind: output, shape index: {0}]   ;;  %s2445_s25 = inlined_call_operand.vmem [shape: bf16[2,16,32], index: 25, kind: output, shape index: {1}]   ;;  %s2446_s26 = inlined_call_operand.vmem [shape: bf16[2,16,32], index: 26, kind: output, shape index: {2}]  }
   0x1   :  { %2451 = sst [smem:[#allocation4_spill]] %s2420_s0 }
   0x2   :  { %2452 = sst [smem:[#allocation5_spill]] %s2421_s1 }
   0x3   :  { %2453 = sst [smem:[#allocation6_spill]] %s2422_s2 }
   0x4   :  { %2454 = sst [smem:[#allocation7_spill]] %s2423_s3 }
   0x5   :  { %2455 = sst [smem:[#allocation8_spill]] %s2424_s4 }
   0x6   :  { %2456 = sst [smem:[#allocation9_spill]] %s2425_s5 }
   0x7   :  { %2457 = sst [smem:[#allocation10_spill]] %s2426_s6 }
   0x8   :  { %2458 = sst [smem:[#allocation11_spill]] %s2427_s7 }
   0x9   :  { %2459 = sst [smem:[#allocation12_spill]] %s2428_s8 }
   0xa   :  { %2460 = sst [smem:[#allocation13_spill]] %s2429_s9 }
   0xb   :  { %2461 = sst [smem:[#allocation14_spill]] %s2430_s10 }
   0xc   :  { %s2462_s7 = sld [smem:[#allocation4_spill]] }
  0x12   :  { %32 = sst [smem:[#allocation3]] %s2462_s7 }
  0x13 LB: > { %s1802_s8 = sadd.s32 4294967295, %s2035_s28   ;;  %p1806_p0 = scmp.ge.s32.totalorder %s2035_s28, 1  ;;  %s2035_s28 = sphi %s2181_s28, %s38_s28  }
  0x14   : > { %p732_p1 = scmp.lt.s32.totalorder %s2035_s28, 3 }
  0x16   : > { %p733_p2 = pnand %p1806_p0, %p732_p1 }
  0x17   : > { %s2463_s0 = sld [smem:[#allocation10_spill]] (!%p733_p2)  ;;  %p826_p3 = scmp.lt.s32.totalorder (!%p733_p2), %s1802_s8, 1 }
  0x18   : > { %736 = sbr.rel (%p733_p2) target bundleno = 3691 (0xe6b), region = 112  ;;  %s2464_s10 = sld [smem:[#allocation5_spill]] (!%p733_p2) }
  0x19   : > { %s2465_s7 = sld [smem:[#allocation6_spill]] (!%p733_p2)  ;;  %s2039_s29 = smov (!%p733_p2), 32  }
  0x1a   : > { %s865_s9 = sld [smem:[#allocation3]] (!%p733_p2) }
  0x1b   : > { %s2466_s5 = sld [smem:[#allocation11_spill]] (!%p733_p2) }
  0x1c   : > { %s2469_s3 = sld [smem:[#allocation7_spill]] (!%p733_p2) }
  0x1d   : > { %v1993_v0 = vld [vmem:[%s2463_s0 + $0x8] sm:$0xff]   ;;  %v2037_v1 = vmov 0.0   ;;  %v1994_v2 = vld [vmem:[%s2463_s0] sm:$0xff]   ;;  %vm2038_vm0 = vmmov 0   ;;  %s2477_s8 = smov (!%p826_p3, %s1802_s8), 1  ;;  %vm885_vm1 = vcmask 261120   ;;  %v930_v5 = vlaneseq }
  0x1e   : > { %1895 = vmatprep.subr.bf16.mxu0 %v2037_v1  ;;  %1915 = vmatprep.subr.bf16.mxu1 %v2037_v1  ;;  %s828_s6 = scalar_lea.vmem %s2464_s10, %s2477_s8  ;;  %s2211_s1 = sshll.u32 %s2477_s8, 3  ;;  %v2040_v10 = vmov 0   ;;  %vm1052_vm8 = vcmask 122880   ;;  %vm1068_vm9 = vcmask 130048   ;;  %vm1176_vm10 = vcmask 253952  }
  0x1f   : > { %1896 = vmatpush3.bf16.msra.mxu0 %v1993_v0  ;;  %1899 = vmatprep.mubr.msk.bf16.mxu0 %vm2038_vm0, %v2037_v1  ;;  %v2208_v3 = vld [vmem:[%s828_s6] sm:$0x1]  ;;  %s833_s4 = scalar_lea.vmem %s2465_s7, %s2211_s1  ;;  %v931_v6 = vshrl.u32 %v930_v5, 7  ;;  %s2041_s10 = smov 96   ;;  %v1049_v28 = vand.u32 127, %v930_v5  ;;  %vm984_vm11 = vcmask 257024  }
  0x20   : > { %1897 = vmatprep.subr.bf16.mxu0 %v2037_v1  ;;  %1919 = vmatprep.mubr.msk.bf16.mxu1 %vm2038_vm0, %v2037_v1  ;;  %v1995_v4 = vld [vmem:[%s833_s4] sm:$0xff]   ;;  %v933_v8 = vstv %s865_s9  ;;  %s2449_s4 = smov 64   ;;  %s2470_s30 = sld [smem:[#allocation12_spill]]  ;;  %v867_v57 = vunpack.c.l.bf16 %v2208_v3  ;;  %vm1639_vm12 = vsmask.f32 256 }
  0x21   : > { %958 = vrot.lane.b32.xlu0 %v1995_v4, %s2039_s29  ;;  %v932_v7 = vadd.s32 8, %v931_v6  ;;  %vm934_vm2 = vcmp.eq.s32.totalorder %v931_v6, %v933_v8  ;;  %v872_v9 = vld [vmem:[%s2466_s5] sm:$0x1]  ;;  %v943_v18 = vsub.s32 0, %v931_v6  ;;  %vm1050_vm7 = vcmp.le.s32.totalorder %v1049_v28, %v933_v8  ;;  %s2472_s27 = sld [smem:[#allocation8_spill]]  ;;  %s861_s6 = scalar_lea.vmem %s2446_s26, %s2211_s1  ;;  %vm1640_vm13 = vmand %vm1176_vm10, %vm1639_vm12 }
  0x22   : > { %vm945_vm4 = vmpackc.low %vm934_vm2, %vm934_vm2  ;;  %s838_s7 = scalar_lea.vmem %s2469_s3, %s2211_s1  ;;  %s2471_s3 = sld [smem:[#allocation13_spill]] }
  0x23   : > { %1898 = vmatpush3.bf16.msra.mxu0 %v1994_v2  ;;  %vm935_vm3 = vcmp.eq.s32.totalorder %v932_v7, %v933_v8  ;;  %v947_v11 = vsel %vm945_vm4, 65537, %v2040_v10  ;;  %v1996_v36 = vld [vmem:[%s838_s7] sm:$0xff]   ;;  %s2473_s9 = sld [smem:[#allocation14_spill]]  ;;  %s851_s29 = scalar_lea.vmem %s2444_s24, %s2477_s8 }
  0x24   : > { %1903 = vmatprep.subr.bf16.mxu0 %v2037_v1  ;;  %vm946_vm5 = vmpackc.low %vm935_vm3, %vm935_vm3  ;;  %v2000_v8 = vld [vmem:[%s2432_s12] sm:$0xff]  }
  0x25   : > { %v948_v12 = vsel %vm946_vm5, 65537, %v2040_v10 }
  0x26   : > { %1900 = vmatmul.mubr.msk.bf16.vlgmr.msra.gmra.mxu0 %vm885_vm1, %v2208_v3  ;;  %v1822_v16 = vcombine.low %v947_v11, %v948_v12  ;;  %v1997_v44 = vld [vmem:[%s2470_s30 + $0x8] sm:$0xff]   ;;  %v1998_v50 = vld [vmem:[%s2470_s30] sm:$0xff]  }
  0x27   : > { %1905 = vmatprep.mubr.msk.bf16.mxu0 %vm2038_vm0, %v2037_v1  ;;  %1916 = vmatpush3.bf16.msra.mxu1 %v1997_v44  ;;  %v1999_v3 = vld [vmem:[%s2432_s12 + $0x8] sm:$0xff]  }
  0x28   : > { %vm2225_vm6 = vcmp.ne.s16.totalorder %v1822_v16, 0  ;;  %1917 = vmatprep.subr.bf16.mxu1 %v2037_v1  ;;  %v1117_v56 = vld [vmem:[%s2471_s3] sm:$0x1]  ;;  %s843_s3 = scalar_lea.vmem %s2472_s27, %s2211_s1 }
  0x2b   : > { %1918 = vmatpush3.bf16.msra.mxu1 %v1998_v50 }
  0x2c   : > { %1931 = vmatprep.subr.bf16.mxu1 %v2037_v1 }
  0x93   : > { %v959_v22 = vpop.permute.xlu0 %958 }
  0xe6   : > { %v923_v13 = vpop.f32.mrf.mxu0 }
  0xe7   : > { %v924_v14 = vadd.f32 %v923_v13, %v872_v9  ;;  %v2001_v9 = vld [vmem:[%s843_s3] sm:$0xff]   ;;  %s2474_s3 = sld [smem:[#allocation9_spill]] }
  0xe8   : > { %v1901_v15 = vpop.f32.mrf.mxu0  ;;  %v1268_v10 = vsel %vm885_vm1, %v2001_v9, 0  ;;  %v2011_v9 = vld [vmem:[%s2440_s20 + $0x18] sm:$0xff]  }
  0xe9   : > { %v929_v17 = vpack.c.bf16 %v924_v14, %v924_v14  ;;  %v1174_v15 = vld [vmem:[%s2473_s9] sm:$0x1]  ;;  %s856_s9 = scalar_lea.vmem %s2445_s25, %s2211_s1 }
  0xea   : > { %v926_v19 = vpop.f32.mrf.mxu0 }
  0xeb   : > { %v939_v20 = vpack.i.b16 %v929_v17, %v929_v17 }
  0xec   : > { %v1902_v21 = vpop.f32.mrf.mxu0 }
  0xed   : > { %v944_v24 = vrot.slane %v939_v20, %v943_v18  ;;  %v1198_v21 = vld [vmem:[%s2433_s13] sm:$0x1]  ;;  %s848_s7 = scalar_lea.vmem %s2474_s3, %s2211_s1  ;;  %s2475_s3 = smov 64  }
  0xef   : > { %v2231_v25 = vsel %vm2225_vm6, %v944_v24, %v959_v22 }
  0xf0   : > { %1000 = vrot.lane.b32.xlu0 %v2231_v25, %s2041_s10 }
 0x162   : > { %v1001_v26 = vpop.permute.xlu0 %1000 }
 0x163   : > { %v1005_v27 = vsel %vm885_vm1, %v1001_v26, 0 }
 0x164   : > { %1904 = vmatpush3.bf16.xpose.msra.mxu0 %v1005_v27 }
 0x165   : > { %1909 = vmatprep.subr.bf16.mxu0 %v2037_v1 }
 0x16b   : > { %1906 = vmatmul.mubr.msk.bf16.vlgmr.msra.gmra.mxu0 %vm885_vm1, %v929_v17  ;;  %v1175_v17 = vld [vmem:[%s2431_s11] sm:$0x1] }
 0x16c   : > { %1911 = vmatprep.mubr.msk.bf16.mxu0 %vm2038_vm0, %v2037_v1 }
 0x22b   : > { %v1041_v29 = vpop.f32.mrf.mxu0 }
 0x22c   : > { %v1047_v30 = vmul.f32 0.17677669, %v1041_v29 }
 0x22d   : > { %v1907_v31 = vpop.f32.mrf.mxu0 }
 0x22e   : > { %v1051_v32 = vsel %vm1050_vm7, %v1047_v30, -1e+30 }
 0x22f   : > { %v1044_v33 = vpop.f32.mrf.mxu0  ;;  %v1053_v34 = vsel %vm1052_vm8, %v1051_v32, -inf }
 0x230   : > { %1054 = vmax.xlane.f32.xlu1 %v1053_v34 }
 0x231   : > { %v1908_v35 = vpop.f32.mrf.mxu0 }
 0x241   : > { %969 = vrot.lane.b32.xlu1 %v1996_v36, %s2449_s4 }
 0x2b9   : > { %v1055_v37 = vpop.xlane.xlu1 %1054 }
 0x2ba   : > { %v1056_v38 = vsub.f32 %v1051_v32, %v1055_v37 }
 0x2bc   : > { %v1057_v39 = vmul.f32 1.442695, %v1056_v38 }
 0x2bd   : > { %v970_v40 = vpop.permute.xlu1 %969 }
 0x2be   : > { %2015 = vpow2.f32 %v1057_v39  ;;  %v2248_v41 = vsel %vm2225_vm6, %v944_v24, %v970_v40  ;;  %v2002_v40 = vld [vmem:[%s848_s7] sm:$0xff]  }
 0x2bf   : > { %1065 = vrot.lane.b32.xlu1 %v2248_v41, %s2449_s4 }
 0x2cb   : > { %v2016_v42 = vpop.eup %2015 }
 0x2cc   : > { %v1059_v43 = vsel %vm1052_vm8, %v2016_v42, 0.0 }
 0x2cd   : > { %1060 = vadd.xlane.f32.xlu0 %v1059_v43 }
 0x331   : > { %v1066_v45 = vpop.permute.xlu1 %1065 }
 0x332   : > { %1910 = vmatpush3.bf16.msra.mxu0 %v1066_v45 }
 0x333   : > { %1923 = vmatprep.subr.bf16.mxu0 %v2037_v1 }
 0x356   : > { %v1061_v46 = vpop.xlane.xlu0 %1060 }
 0x357   : > { %2017 = vrcp.f32 %v1061_v46 }
 0x364   : > { %v2018_v47 = vpop.eup %2017 }
 0x365   : > { %v1063_v48 = vmul.f32 %v2018_v47, %v2016_v42  ;;  %v2003_v42 = vld [vmem:[%s2434_s14 + $0x8] sm:$0xff]   ;;  %v2004_v47 = vld [vmem:[%s2434_s14] sm:$0xff]  }
 0x367   : > { %v1064_v49 = vpack.c.bf16 %v1063_v48, %v1063_v48 }
 0x369   : > { %1912 = vmatmul.mubr.msk.bf16.vlgmr.msra.gmra.mxu0 %vm1068_vm9, %v1064_v49 }
 0x36a   : > { %1927 = vmatprep.mubr.msk.bf16.mxu0 %vm2038_vm0, %v2037_v1  ;;  %1924 = vmatpush3.bf16.msra.mxu0 %v1999_v3  ;;  %v2009_v3 = vld [vmem:[%s2440_s20 + $0x28] sm:$0xff]  }
 0x36b   : > { %1925 = vmatprep.subr.bf16.mxu0 %v2037_v1 }
 0x36e   : > { %1926 = vmatpush3.bf16.msra.mxu0 %v2000_v8  ;;  %v2010_v8 = vld [vmem:[%s2440_s20 + $0x20] sm:$0xff]  }
 0x36f   : > { %1937 = vmatprep.subr.bf16.mxu0 %v2037_v1 }
 0x429   : > { %v1106_v51 = vpop.f32.mrf.mxu0 }
 0x42a   : > { %v1112_v52 = vpack.c.bf16 %v1106_v51, %v1106_v51 }
 0x42b   : > { %v1913_v53 = vpop.f32.mrf.mxu0 }
 0x42c   : > { %1920 = vmatmul.mubr.msk.bf16.vlgmr.msra.gmra.mxu1 %vm885_vm1, %v1112_v52  ;;  %v1377_v53 = vld [vmem:[%s2435_s15] sm:$0x1] }
 0x42d   : > { %v1109_v54 = vpop.f32.mrf.mxu0  ;;  %1933 = vmatprep.mubr.msk.bf16.mxu1 %vm2038_vm0, %v2037_v1  ;;  %1932 = vmatpush3.bf16.xpose.msra.mxu1 %v1268_v10  ;;  %v2012_v10 = vld [vmem:[%s2440_s20 + $0x10] sm:$0xff]  }
 0x42e   : > { %1943 = vmatprep.subr.bf16.mxu1 %v2037_v1 }
 0x42f   : > { %v1914_v55 = vpop.f32.mrf.mxu0 }
 0x4ec   : > { %v1167_v58 = vpop.f32.mrf.mxu1 }
 0x4ed   : > { %v1168_v59 = vadd.f32 %v1167_v58, %v1117_v56 }
 0x4ee   : > { %v1921_v60 = vpop.f32.mrf.mxu1 }
 0x4ef   : > { %v1173_v61 = vadd.f32 %v1168_v59, %v867_v57 }
 0x4f0   : > { %v1170_v62 = vpop.f32.mrf.mxu1 }
 0x4f1   : > { %v1177_v63 = vsel %vm1176_vm10, %v1173_v61, 0.0 }
 0x4f2   : > { %v1922_v0 = vpop.f32.mrf.mxu1  ;;  %1178 = vadd.xlane.f32.xlu1 %v1177_v63 }
 0x57b   : > { %v1179_v2 = vpop.xlane.xlu1 %1178 }
 0x57c   : > { %v1181_v4 = vmul.f32 0.03125, %v1179_v2 }
 0x57e   : > { %v1182_v5 = vsub.f32 %v1173_v61, %v1181_v4  ;;  %v2005_v4 = vld [vmem:[%s2438_s18 + $0x8] sm:$0xff]  }
 0x580   : > { %v1183_v6 = vmul.f32 %v1182_v5, %v1182_v5 }
 0x582   : > { %v1184_v7 = vsel %vm1176_vm10, %v1183_v6, 0.0  ;;  %v2007_v6 = vld [vmem:[%s2440_s20 + $0x38] sm:$0xff]  }
 0x583   : > { %1185 = vadd.xlane.f32.xlu0 %v1184_v7  ;;  %v2008_v7 = vld [vmem:[%s2440_s20 + $0x30] sm:$0xff]  }
 0x60c   : > { %v1186_v11 = vpop.xlane.xlu0 %1185 }
 0x60d   : > { %v1187_v12 = vmul.f32 0.03125, %v1186_v11 }
 0x60f   : > { %v1188_v13 = vadd.f32 1e-05, %v1187_v12 }
 0x611   : > { %2019 = vrsqrt.f32 %v1188_v13 }
 0x61e   : > { %v2020_v14 = vpop.eup %2019 }
 0x61f   : > { %v1190_v16 = vmul.f32 %v2020_v14, %v1182_v5  ;;  %v2006_v5 = vld [vmem:[%s2438_s18] sm:$0xff]  }
 0x621   : > { %v1191_v18 = vmul.f32 %v1190_v16, %v1174_v15  ;;  %v1434_v15 = vld [vmem:[%s2436_s16] sm:$0x1] }
 0x623   : > { %v1192_v19 = vadd.f32 %v1191_v18, %v1175_v17  ;;  %v1435_v17 = vld [vmem:[%s2437_s17] sm:$0x1] }
 0x625   : > { %v1193_v20 = vpack.c.bf16 %v1192_v19, %v1192_v19 }
 0x627   : > { %1928 = vmatmul.mubr.msk.bf16.vlgmr.msra.gmra.mxu0 %vm885_vm1, %v1193_v20 }
 0x628   : > { %1939 = vmatprep.mubr.msk.bf16.mxu0 %vm2038_vm0, %v2037_v1  ;;  %1938 = vmatpush3.bf16.msra.mxu0 %v2002_v40  ;;  %v1828_v40 = vcombine.high %v2248_v41, %v2248_v41 }
 0x629   : > { %1951 = vmatprep.subr.bf16.mxu0 %v2037_v1 }
 0x6e7   : > { %v1248_v22 = vpop.f32.mrf.mxu0 }
 0x6e8   : > { %v1249_v23 = vadd.f32 %v1248_v22, %v1198_v21  ;;  %v2013_v21 = vld [vmem:[%s2440_s20 + $0x8] sm:$0xff]   ;;  %v2014_v22 = vld [vmem:[%s2440_s20] sm:$0xff]  }
 0x6e9   : > { %v1929_v24 = vpop.f32.mrf.mxu0 }
 0x6ea   : > { %v1258_v26 = vpack.c.bf16 %v1249_v23, %v1249_v23  ;;  %v1456_v23 = vld [vmem:[%s2439_s19] sm:$0x1] }
 0x6eb   : > { %v1251_v27 = vpop.f32.mrf.mxu0 }
 0x6ec   : > { %1934 = vmatmul.mubr.msk.bf16.vlgmr.msra.gmra.mxu1 %vm885_vm1, %v1258_v26 }
 0x6ed   : > { %v1930_v28 = vpop.f32.mrf.mxu0  ;;  %1947 = vmatprep.mubr.msk.bf16.mxu1 %vm2038_vm0, %v2037_v1  ;;  %1944 = vmatpush3.bf16.msra.mxu1 %v2003_v42 }
 0x6ee   : > { %1945 = vmatprep.subr.bf16.mxu1 %v2037_v1 }
 0x6f1   : > { %1946 = vmatpush3.bf16.msra.mxu1 %v2004_v47 }
 0x6f2   : > { %1959 = vmatprep.subr.bf16.mxu1 %v2037_v1 }
 0x7ac   : > { %v1304_v29 = vpop.f32.mrf.mxu1 }
 0x7ad   : > { %v1310_v30 = vmul.f32 0.17677669, %v1304_v29 }
 0x7ae   : > { %v1935_v31 = vpop.f32.mrf.mxu1 }
 0x7af   : > { %v1311_v32 = vsel %vm1052_vm8, %v1310_v30, -inf }
 0x7b0   : > { %1312 = vmax.xlane.f32.xlu0 %v1311_v32  ;;  %v1307_v33 = vpop.f32.mrf.mxu1 }
 0x7b2   : > { %v1936_v34 = vpop.f32.mrf.mxu1 }
 0x839   : > { %v1313_v35 = vpop.xlane.xlu0 %1312 }
 0x83a   : > { %v1314_v36 = vsub.f32 %v1310_v30, %v1313_v35 }
 0x83c   : > { %v1315_v37 = vmul.f32 1.442695, %v1314_v36 }
 0x83e   : > { %2021 = vpow2.f32 %v1315_v37 }
 0x84b   : > { %v2022_v38 = vpop.eup %2021 }
 0x84c   : > { %v1317_v39 = vsel %vm1052_vm8, %v2022_v38, 0.0 }
 0x84d   : > { %1318 = vadd.xlane.f32.xlu0 %v1317_v39  ;;  %v1825_v39 = vcombine.low %v2231_v25, %v2231_v25 }
 0x8d6   : > { %v1319_v43 = vpop.xlane.xlu0 %1318 }
 0x8d7   : > { %2023 = vrcp.f32 %v1319_v43 }
 0x8e4   : > { %v2024_v44 = vpop.eup %2023 }
 0x8e5   : > { %v1321_v45 = vmul.f32 %v2024_v44, %v2022_v38 }
 0x8e7   : > { %v1322_v46 = vpack.c.bf16 %v1321_v45, %v1321_v45 }
 0x8e9   : > { %1940 = vmatmul.mubr.msk.bf16.vlgmr.msra.gmra.mxu0 %vm1068_vm9, %v1322_v46 }
 0x8ea   : > { %1955 = vmatprep.mubr.msk.bf16.mxu0 %vm2038_vm0, %v2037_v1  ;;  %1952 = vmatpush3.bf16.msra.mxu0 %v2005_v4 }
 0x8eb   : > { %1953 = vmatprep.subr.bf16.mxu0 %v2037_v1 }
 0x8ee   : > { %1954 = vmatpush3.bf16.msra.mxu0 %v2006_v5 }
 0x9a9   : > { %v1366_v48 = vpop.f32.mrf.mxu0 }
 0x9aa   : > { %v1372_v49 = vpack.c.bf16 %v1366_v48, %v1366_v48 }
 0x9ab   : > { %v1941_v50 = vpop.f32.mrf.mxu0 }
 0x9ac   : > { %1948 = vmatmul.mubr.msk.bf16.vlgmr.msra.gmra.mxu1 %vm885_vm1, %v1372_v49  ;;  %v1826_v49 = vcombine.high %v2231_v25, %v2231_v25  ;;  %v1827_v50 = vcombine.low %v2248_v41, %v2248_v41  ;;  %v1620_v25 = vld [vmem:[%s2442_s22] sm:$0x1] }
 0x9ad   : > { %v1369_v51 = vpop.f32.mrf.mxu0  ;;  %1975 = vmatprep.mubr.msk.bf16.mxu1 %vm2038_vm0, %v2037_v1  ;;  %1960 = vmatpush3.bf16.msra.mxu1 %v2007_v6  ;;  %v1621_v41 = vld [vmem:[%s2443_s23] sm:$0x1] }
 0x9ae   : > { %1961 = vmatprep.subr.bf16.mxu1 %v2037_v1 }
 0x9af   : > { %v1942_v52 = vpop.f32.mrf.mxu0 }
 0x9b1   : > { %1962 = vmatpush3.bf16.msra.mxu1 %v2008_v7 }
 0x9b2   : > { %1963 = vmatprep.subr.bf16.mxu1 %v2037_v1 }
 0x9b5   : > { %1964 = vmatpush3.bf16.msra.mxu1 %v2009_v3 }
 0x9b6   : > { %1965 = vmatprep.subr.bf16.mxu1 %v2037_v1 }
 0x9b9   : > { %1966 = vmatpush3.bf16.msra.mxu1 %v2010_v8 }
 0x9ba   : > { %1967 = vmatprep.subr.bf16.mxu1 %v2037_v1 }
 0x9bd   : > { %1968 = vmatpush3.bf16.msra.mxu1 %v2011_v9 }
 0x9be   : > { %1969 = vmatprep.subr.bf16.mxu1 %v2037_v1 }
 0x9c1   : > { %1970 = vmatpush3.bf16.msra.mxu1 %v2012_v10 }
 0x9c2   : > { %1971 = vmatprep.subr.bf16.mxu1 %v2037_v1 }
 0x9c5   : > { %1972 = vmatpush3.bf16.msra.mxu1 %v2013_v21 }
 0x9c6   : > { %1973 = vmatprep.subr.bf16.mxu1 %v2037_v1  ;;  %v1530_v1 = vld [vmem:[%s2441_s21] sm:$0x1] }
 0x9c9   : > { %1974 = vmatpush3.bf16.msra.mxu1 %v2014_v22 }
 0xa6c   : > { %v1427_v54 = vpop.f32.mrf.mxu1 }
 0xa6d   : > { %v1428_v55 = vadd.f32 %v1427_v54, %v1377_v53 }
 0xa6e   : > { %v1949_v56 = vpop.f32.mrf.mxu1 }
 0xa6f   : > { %v1433_v57 = vadd.f32 %v1428_v55, %v1192_v19 }
 0xa70   : > { %v1430_v58 = vpop.f32.mrf.mxu1 }
 0xa71   : > { %v1436_v59 = vsel %vm1176_vm10, %v1433_v57, 0.0 }
 0xa72   : > { %1437 = vadd.xlane.f32.xlu0 %v1436_v59  ;;  %v1950_v60 = vpop.f32.mrf.mxu1 }
 0xa73   : > { %v1641_v60 = vld [vmem:[%s851_s29] sm:$0x1] }
 0xafb   : > { %v1438_v61 = vpop.xlane.xlu0 %1437 }
 0xafc   : > { %v1439_v62 = vmul.f32 0.03125, %v1438_v61 }
 0xafe   : > { %v1440_v63 = vsub.f32 %v1433_v57, %v1439_v62 }
 0xb00   : > { %v1441_v0 = vmul.f32 %v1440_v63, %v1440_v63 }
 0xb02   : > { %v1442_v2 = vsel %vm1176_vm10, %v1441_v0, 0.0 }
 0xb03   : > { %1443 = vadd.xlane.f32.xlu0 %v1442_v2 }
 0xb8c   : > { %v1444_v11 = vpop.xlane.xlu0 %1443 }
 0xb8d   : > { %v1445_v12 = vmul.f32 0.03125, %v1444_v11 }
 0xb8f   : > { %v1446_v13 = vadd.f32 1e-05, %v1445_v12 }
 0xb91   : > { %2025 = vrsqrt.f32 %v1446_v13 }
 0xb9e   : > { %v2026_v14 = vpop.eup %2025 }
 0xb9f   : > { %v1448_v16 = vmul.f32 %v2026_v14, %v1440_v63 }
 0xba1   : > { %v1449_v18 = vmul.f32 %v1448_v16, %v1434_v15 }
 0xba3   : > { %v1450_v19 = vadd.f32 %v1449_v18, %v1435_v17 }
 0xba5   : > { %v1451_v20 = vpack.c.bf16 %v1450_v19, %v1450_v19 }
 0xba7   : > { %1956 = vmatmul.mubr.msk.bf16.vlgmr.msra.gmra.mxu0 %vm885_vm1, %v1451_v20 }
 0xc67   : > { %v1506_v24 = vpop.f32.mrf.mxu0 }
 0xc68   : > { %v1507_v26 = vadd.f32 %v1506_v24, %v1456_v23 }
 0xc69   : > { %v1957_v27 = vpop.f32.mrf.mxu0 }
 0xc6a   : > { %v1512_v28 = vmax.f32 %v1507_v26, 0.0 }
 0xc6b   : > { %v1509_v29 = vpop.f32.mrf.mxu0 }
 0xc6c   : > { %v1513_v30 = vpack.c.bf16 %v1512_v28, %v1512_v28 }
 0xc6d   : > { %v1958_v31 = vpop.f32.mrf.mxu0 }
 0xc6e   : > { %1976 = vmatmul.mubr.bf16.vlgmr.msra.gmra.mxu1 %v1513_v30 }
 0xd2e   : > { %v1613_v32 = vpop.f32.mrf.mxu1 }
 0xd2f   : > { %v1614_v33 = vadd.f32 %v1613_v32, %v1530_v1 }
 0xd30   : > { %v1977_v34 = vpop.f32.mrf.mxu1 }
 0xd31   : > { %v1619_v35 = vadd.f32 %v1614_v33, %v1450_v19 }
 0xd32   : > { %v1616_v36 = vpop.f32.mrf.mxu1 }
 0xd33   : > { %v1622_v37 = vsel %vm1176_vm10, %v1619_v35, 0.0 }
 0xd34   : > { %1623 = vadd.xlane.f32.xlu0 %v1622_v37  ;;  %v1978_v38 = vpop.f32.mrf.mxu1 }
 0xd4a   : > { %978 = vrot.lane.b32.xlu0 %v1825_v39, %s2041_s10 }
 0xd4e   : > { %994 = vrot.lane.b32.xlu0 %v1828_v40, %s2475_s3 }
 0xdbd   : > { %v1624_v42 = vpop.xlane.xlu0 %1623 }
 0xdbe   : > { %v1625_v43 = vmul.f32 0.03125, %v1624_v42 }
 0xdc0   : > { %v1626_v44 = vsub.f32 %v1619_v35, %v1625_v43 }
 0xdc1   : > { %v979_v45 = vpop.permute.xlu0 %978 }
 0xdc2   : > { %985 = vst.msk [vmem:[%s856_s9] sm:$0xf] %vm984_vm11, %v979_v45  ;;  %v1627_v46 = vmul.f32 %v1626_v44, %v1626_v44 }
 0xdc4   : > { %v1628_v47 = vsel %vm1176_vm10, %v1627_v46, 0.0 }
 0xdc5   : > { %1629 = vadd.xlane.f32.xlu1 %v1628_v47  ;;  %v995_v48 = vpop.permute.xlu0 %994 }
 0xdc6   : > { %999 = vst.msk [vmem:[%s861_s6 + $0x4] sm:$0xf] %vm984_vm11, %v995_v48 }
 0xdd6   : > { %980 = vrot.lane.b32.xlu1 %v1826_v49, %s2041_s10 }
 0xdda   : > { %992 = vrot.lane.b32.xlu1 %v1827_v50, %s2475_s3 }
 0xe4e   : > { %v1630_v51 = vpop.xlane.xlu1 %1629 }
 0xe4f   : > { %v1631_v52 = vmul.f32 0.03125, %v1630_v51 }
 0xe51   : > { %v1632_v53 = vadd.f32 1e-05, %v1631_v52 }
 0xe52   : > { %v981_v54 = vpop.permute.xlu1 %980 }
 0xe53   : > { %2027 = vrsqrt.f32 %v1632_v53  ;;  %986 = vst.msk [vmem:[%s856_s9 + $0x4] sm:$0xf] %vm984_vm11, %v981_v54 }
 0xe56   : > { %v993_v55 = vpop.permute.xlu1 %992 }
 0xe57   : > { %998 = vst.msk [vmem:[%s861_s6] sm:$0xf] %vm984_vm11, %v993_v55 }
 0xe60   : > { %v2028_v56 = vpop.eup %2027 }
 0xe61   : > { %v1634_v57 = vmul.f32 %v2028_v56, %v1626_v44 }
 0xe63   : > { %v1635_v58 = vmul.f32 %v1634_v57, %v1620_v25 }
 0xe65   : > { %v1636_v59 = vadd.f32 %v1635_v58, %v1621_v41 }
 0xe67   : > { %v1637_v61 = vpack.c.bf16 %v1636_v59, %v1636_v59 }
 0xe69   : > { %v1642_v62 = vsel %vm1640_vm13, %v1637_v61, %v1641_v60 }
 0xe6a   : > { %1643 = vst [vmem:[%s851_s29] sm:$0x1] %v1642_v62 }
 0xe6b PF: > { %s38_s28 = sadd.s32 1, %s2035_s28  }
 0xe6c   : > { %p35_p4 = scmp.ge.s32.totalorder %s38_s28, 4  }
 0xe6e   :  { %37 = sbr.rel (!%p35_p4) target bundleno = 19 (0x13), region = 178 }

</bundles_post_ra>
